<compile_context>
chip_gen: v6e
topology: v6e:2x2x1
jax: 0.10.0
libtpu: 0.0.40
codegen_flags: <defaults>
</compile_context>

<pallas_src>
import functools

import jax
import jax.numpy as jnp
from jax.experimental import pallas as pl
from jax.experimental.pallas import tpu as pltpu


# ----------------------------------------------------------------------------
# Fused per-grid-step kernel (Bblk images per step, channel-major, lane-dense)
# ----------------------------------------------------------------------------
def _fused_kernel(x_ref, smp_ref, mask_ref, w_ref, b_ref, out_ref, *,
                  H, W, Cin, C1d, c1, c2, out_ch, K, M, Bblk, kernel_size,
                  w_offs, b_offs):
    N = H * W
    L = Bblk * N
    off_w1, off_wq, off_wsmp, off_wf = w_offs
    off_b1, off_bq, off_bk, off_b2, off_bf = b_offs

    xc = x_ref[0]                                   # (C1d, L)   lane-dense
    xs = smp_ref[0]                                 # (C1d, Bblk*M)

    # ------------- branch 1: Conv2d(Cin -> c1, ks, 'same') + ReLU -----------
    # All 9 taps are rolled, border-masked and stacked into one operand so the
    # whole conv is a single MXU matmul with contracting dim ks*ks*Cin.
    x_img = xc[:Cin, :]                             # coords not fed to branch1
    p = (kernel_size - 1) // 2
    taps = []
    t = 0
    for dy in range(-p, p + 1):
        for dx in range(-p, p + 1):
            off = dy * W + dx                       # flat-token offset of tap
            shifted = x_img if off == 0 else pltpu.roll(x_img, (-off) % L, axis=1)
            taps.append(shifted * mask_ref[pl.ds(t, 1), :])    # (Cin, L)*(1, L)
            t += 1
    tap_stack = jnp.concatenate(taps, axis=0)       # (ks*ks*Cin, L)
    nt = kernel_size * kernel_size * Cin
    w1 = w_ref[off_w1:off_w1 + c1, 0:nt]            # (c1, ks*ks*Cin)
    b1 = b_ref[off_b1:off_b1 + c1, :]               # (c1, 1)
    br1 = jnp.maximum(
        jnp.dot(w1, tap_stack, preferred_element_type=jnp.float32) + b1, 0.0)

    # ------------- branch 2: Conv2d_NN_Attn_Spatial(Cin -> c2) + ReLU -------
    wq = w_ref[off_wq:off_wq + C1d, 0:C1d]
    bq = b_ref[off_bq:off_bq + C1d, :]
    q = jnp.dot(wq, xc, preferred_element_type=jnp.float32) + bq       # (C1d, L)

    # single matmul against sampled tokens: rows = [K projection ; folded
    # per-rank (Conv1d o pointwise o V) weights]
    wsmp = w_ref[off_wsmp:off_wsmp + C1d + K * c2, 0:C1d]
    proj = jnp.dot(wsmp, xs, preferred_element_type=jnp.float32)        # (C1d+K*c2, Bblk*M)
    bk = b_ref[off_bk:off_bk + C1d, :]
    kk_all = proj[0:C1d, :] + bk                                        # (C1d, Bblk*M)
    vv_all = proj[C1d:C1d + K * c2, :]                                  # (K*c2, Bblk*M)

    acc_parts = []
    for bi in range(Bblk):                         # per-image top-K (unrolled)
        q_i = q[:, bi * N:(bi + 1) * N]            # (C1d, N)
        kk_i = kk_all[:, bi * M:(bi + 1) * M]      # (C1d, M)
        vv_i = vv_all[:, bi * M:(bi + 1) * M]      # (K*c2, M)

        # transposed (lane-dense) similarity: sim[m, n] = k_m . q_n
        sim = jax.lax.dot_general(kk_i, q_i, (((0,), (0,)), ((), ())),
                                  preferred_element_type=jnp.float32)   # (M, N)
        rid = jax.lax.broadcasted_iota(jnp.int32, (M, N), 0).astype(jnp.float32)

        acc_i = jnp.zeros((c2, N), jnp.float32)
        s = sim
        # K=3 iterative top-K on the VPU/XLU; gather via one-hot matmul on MXU.
        for j in range(K):
            mval = jnp.max(s, axis=0, keepdims=True)                    # (1, N)
            first = jnp.min(jnp.where(s >= mval, rid, float(M)),
                            axis=0, keepdims=True)                      # first argmax
            sel = rid == first                                          # (M, N) one-hot cols
            acc_i = acc_i + jnp.dot(vv_i[j * c2:(j + 1) * c2, :],
                                    sel.astype(jnp.float32),
                                    preferred_element_type=jnp.float32)  # (c2, N)
            if j < K - 1:
                s = jnp.where(sel, -1e30, s)                            # mask next pick
        acc_parts.append(acc_i)
    acc2 = acc_parts[0] if Bblk == 1 else jnp.concatenate(acc_parts, axis=1)
    b2 = b_ref[off_b2:off_b2 + c2, :]
    br2 = jnp.maximum(acc2 + b2, 0.0)                                   # (c2, L)

    # ------------- final 1x1 conv over concat([branch1, branch2]) -----------
    wf = w_ref[off_wf:off_wf + out_ch, 0:c1 + c2]                       # (out, c1+c2)
    bf = b_ref[off_bf:off_bf + out_ch, :]
    cat = jnp.concatenate([br1, br2], axis=0)                           # (8, L) sublane-full
    y = jnp.dot(wf, cat, preferred_element_type=jnp.float32) + bf
    out_ref[0] = y.astype(out_ref.dtype)                                # lane-dense store


# ----------------------------------------------------------------------------
# Input-independent constants (constant-folded under jit)
# ----------------------------------------------------------------------------
def coordinate_channels(H, W):
    """Matches Conv2d_NN_Attn_Spatial.coordinate_channels (F.normalize p=2 dim=1)."""
    xg = jnp.broadcast_to(jnp.arange(H, dtype=jnp.float32)[:, None], (H, W))
    yg = jnp.broadcast_to(jnp.arange(W, dtype=jnp.float32)[None, :], (H, W))
    norm = jnp.maximum(jnp.sqrt(xg * xg + yg * yg), 1e-12)
    return jnp.stack([xg / norm, yg / norm], axis=0).reshape(2, H * W)   # (2, N)


def sample_flat_indices(H, W, samples, padding=0):
    """Flat token indices of the samples x samples spatial grid."""
    x_ind = jnp.round(jnp.linspace(padding, H - 1 - padding, samples)).astype(jnp.int32)
    y_ind = jnp.round(jnp.linspace(padding, W - 1 - padding, samples)).astype(jnp.int32)
    xg, yg = jnp.meshgrid(x_ind, y_ind, indexing="ij")
    return (xg * W + yg).reshape(-1)                                     # (samples^2,)


def conv_tap_masks(H, W, kernel_size):
    """Zero-padding border masks for every tap of the 'same' conv, flattened."""
    p = (kernel_size - 1) // 2
    hh = jnp.arange(H)[:, None]
    ww = jnp.arange(W)[None, :]
    masks = []
    for dy in range(-p, p + 1):
        for dx in range(-p, p + 1):
            valid = ((hh + dy >= 0) & (hh + dy < H) &
                     (ww + dx >= 0) & (ww + dx < W))
            masks.append(valid.reshape(-1))
    return jnp.stack(masks, axis=0).astype(jnp.float32)                  # (ks*ks, N)


# ----------------------------------------------------------------------------
# Parameter packing helpers (2 DMA blocks instead of 14)
# ----------------------------------------------------------------------------
def _round_up8(n):
    return ((n + 7) // 8) * 8


def _pack_rows(blocks, cols):
    """Stack 2-D blocks along rows, each zero-padded to an 8-aligned row count
    and a common column width.  Returns (packed, static row offsets)."""
    padded, offs, cur = [], [], 0
    for blk in blocks:
        r, c = blk.shape
        rp = _round_up8(r)
        padded.append(jnp.pad(blk.astype(jnp.float32),
                              ((0, rp - r), (0, cols - c))))
        offs.append(cur)
        cur += rp
    return jnp.concatenate(padded, axis=0), tuple(offs)


# ----------------------------------------------------------------------------
# Forward pass (single fused pallas_call)
# ----------------------------------------------------------------------------
def conv2d_convnn_attn_spatial_branching(x, params, *, K, samples, kernel_size,
                                         block_batch=None):
    B, Cin, H, W = x.shape
    N = H * W
    C1d = Cin + 2
    c1 = params["b1"].shape[0]
    c2 = params["b_pw2"].shape[0]
    out_ch = params["bf"].shape[0]
    M = samples * samples

    # Per-grid-step batching: amortize launch/prologue overhead; keep >=2 grid
    # steps when possible so both v7x TensorCores get work (megacore).
    if block_batch is None:
        block_batch = B // 2 if (B % 2 == 0 and B >= 2) else 1
    Bblk = max(1, block_batch)
    while B % Bblk != 0:
        Bblk -= 1
    G = B // Bblk
    L = Bblk * N
    Lm = Bblk * M

    # Input-independent constants.
    coords = coordinate_channels(H, W)                                   # (2, N)
    masks = conv_tap_masks(H, W, kernel_size)                            # (ks*ks, N)
    masks_blk = jnp.tile(masks, (1, Bblk)) if Bblk > 1 else masks        # (ks*ks, L)
    flat_idx = sample_flat_indices(H, W, samples)                        # (M,)

    # Channel-major augmented input; sampled tokens gathered host-side with
    # static indices (no in-kernel one-hot matmul).
    x_aug = jnp.concatenate(
        [x.reshape(B, Cin, N), jnp.broadcast_to(coords[None], (B, 2, N))], axis=1)
    x_smp = jnp.take(x_aug, flat_idx, axis=2)                            # (B, C1d, M)

    def to_blocks(a, n_last):
        if Bblk == 1:
            return a                                                     # (G, C1d, n_last)
        return (a.reshape(G, Bblk, C1d, n_last)
                 .transpose(0, 2, 1, 3).reshape(G, C1d, Bblk * n_last))

    x_blk = to_blocks(x_aug, N)                                          # (G, C1d, L)
    s_blk = to_blocks(x_smp, M)                                          # (G, C1d, Lm)

    # ---------------- host-side weight folding ------------------------------
    nt = kernel_size * kernel_size * Cin
    w1_flat = params["w1"].reshape(nt, c1).T                             # (c1, ks*ks*Cin)

    # Conv1d(K,stride=K) followed (no nonlinearity) by the (c2+2 -> c2)
    # pointwise conv collapses into one matmul ...
    w2 = params["w_conv"] @ params["w_pw2"]                              # (K*C1d, c2)
    b2 = params["b_conv"] @ params["w_pw2"] + params["b_pw2"]            # (c2,)
    w2_cm = jnp.transpose(w2.reshape(K, C1d, c2), (0, 2, 1))             # (K, c2, C1d)
    # ... and the V projection folds into the per-rank conv weights.
    wv_cm = params["wv"].T                                               # (C1d, C1d)
    wprime = jnp.einsum("kij,jl->kil", w2_cm, wv_cm).reshape(K * c2, C1d)
    b2_total = jnp.einsum("kij,j->i", w2_cm, params["bv"]) + b2          # (c2,)

    wq_cm = params["wq"].T
    wk_cm = params["wk"].T
    wsmp = jnp.concatenate([wk_cm, wprime], axis=0)                      # (C1d+K*c2, C1d)
    wf_cm = params["wf"].T                                               # (out, c1+c2)

    # Pack everything into two resident blocks, sliced in-kernel at static
    # 8-aligned offsets (fewer DMA descriptors / semaphore waits in prologue).
    wcols = max(nt, C1d, c1 + c2)
    wpack, w_offs = _pack_rows([w1_flat, wq_cm, wsmp, wf_cm], wcols)
    bpack, b_offs = _pack_rows(
        [params["b1"].reshape(c1, 1), params["bq"].reshape(C1d, 1),
         params["bk"].reshape(C1d, 1), b2_total.reshape(c2, 1),
         params["bf"].reshape(out_ch, 1)], 1)

    kernel = functools.partial(
        _fused_kernel, H=H, W=W, Cin=Cin, C1d=C1d, c1=c1, c2=c2,
        out_ch=out_ch, K=K, M=M, Bblk=Bblk, kernel_size=kernel_size,
        w_offs=w_offs, b_offs=b_offs)

    y = pl.pallas_call(
        kernel,
        out_shape=jax.ShapeDtypeStruct((G, out_ch, L), jnp.float32),
        grid=(G,),
        in_specs=[
            pl.BlockSpec((1, C1d, L), lambda g: (g, 0, 0)),              # images
            pl.BlockSpec((1, C1d, Lm), lambda g: (g, 0, 0)),             # sampled tokens
            pl.BlockSpec(masks_blk.shape, lambda g: (0, 0)),             # conv tap masks
            pl.BlockSpec(wpack.shape, lambda g: (0, 0)),                 # packed weights
            pl.BlockSpec(bpack.shape, lambda g: (0, 0)),                 # packed biases
        ],
        out_specs=pl.BlockSpec((1, out_ch, L), lambda g: (g, 0, 0)),
        compiler_params=pltpu.CompilerParams(
            dimension_semantics=("parallel",)),
    )(x_blk, s_blk, masks_blk, wpack, bpack)

    if Bblk == 1:
        return y.reshape(B, out_ch, H, W)
    return (y.reshape(G, out_ch, Bblk, N).transpose(0, 2, 1, 3)
             .reshape(B, out_ch, H, W))


# ----------------------------------------------------------------------------
# Deterministic parameter init
# ----------------------------------------------------------------------------
def init_params(key, in_channels, out_channels, channel_ratio, K, kernel_size):
    C1d = in_channels + 2                  # + coordinate (location) channels
    c1, c2 = channel_ratio
    Co1d = c2 + 2                          # Conv1d_NN_Attn_Spatial out_channels_1d
    ks = jax.random.split(key, 14)
    s = 0.1

    def nrm(k, shape):
        return s * jax.random.normal(k, shape, jnp.float32)

    return {
        # branch1: Conv2d(Cin -> c1, kernel_size), weight as (tap, cin, cout)
        "w1": nrm(ks[0], (kernel_size * kernel_size, in_channels, c1)),
        "b1": nrm(ks[1], (c1,)),
        # Conv1d_NN_Attn_Spatial q/k/v channel projections (C1d -> C1d)
        "wq": nrm(ks[2], (C1d, C1d)), "bq": nrm(ks[3], (C1d,)),
        "wk": nrm(ks[4], (C1d, C1d)), "bk": nrm(ks[5], (C1d,)),
        "wv": nrm(ks[6], (C1d, C1d)), "bv": nrm(ks[7], (C1d,)),
        # Conv1d(kernel=K, stride=K): weight flattened as (K*C1d, Co1d)
        "w_conv": nrm(ks[8], (K * C1d, Co1d)),
        "b_conv": nrm(ks[9], (Co1d,)),
        # Conv2d_NN_Attn_Spatial pointwise conv (Co1d -> c2)
        "w_pw2": nrm(ks[10], (Co1d, c2)),
        "b_pw2": nrm(ks[11], (c2,)),
        # final pointwise conv (c1 + c2 -> out)
        "wf": nrm(ks[12], (c1 + c2, out_channels)),
        "bf": nrm(ks[13], (out_channels,)),
    }


# ----------------------------------------------------------------------------
if __name__ == "__main__":
    # Module config: Conv2d_ConvNN_Attn_Spatial_Branching(in=4, out=4,
    #   channel_ratio=(4,4), kernel_size=3, K=3, shuffle_pattern='NA',
    #   shuffle_scale=2, samples=8, image_size=(16,16),
    #   magnitude_type='similarity', location_channels=True)
    B, Cin, H, W = 2, 4, 16, 16
    out_channels = 4
    channel_ratio = (4, 4)                 # sums to 2*out_channels
    kernel_size = 3
    K = 3                                  # K == stride
    samples = 8                            # 8x8 spatial sample grid -> 64 candidates

    key = jax.random.PRNGKey(0)
    k_x, k_p = jax.random.split(key)
    x = jax.random.normal(k_x, (B, Cin, H, W), jnp.float32)
    params = init_params(k_p, Cin, out_channels, channel_ratio, K, kernel_size)

    fwd = jax.jit(functools.partial(conv2d_convnn_attn_spatial_branching,
                                    K=K, samples=samples, kernel_size=kernel_size))
    y = fwd(x, params)
    jax.block_until_ready(y)

    assert y.shape == (B, out_channels, H, W), y.shape
    assert bool(jnp.all(jnp.isfinite(y)))
    print("KERNEL_OK")
</pallas_src>

<mosaic_0001>
module attributes {stable_mosaic.version = 11 : i64} {
  func.func @_fused_kernel(%arg0: i32, %arg1: memref<1x6x256xf32, #tpu.memory_space<vmem>>, %arg2: memref<1x6x64xf32, #tpu.memory_space<vmem>>, %arg3: memref<9x256xf32, #tpu.memory_space<vmem>>, %arg4: memref<48x36xf32, #tpu.memory_space<vmem>>, %arg5: memref<40x1xf32, #tpu.memory_space<vmem>>, %arg6: memref<1x4x256xf32, #tpu.memory_space<vmem>>) attributes {dimension_semantics = [#tpu.dimension_semantics<parallel>], iteration_bounds = array<i64: 2>, scalar_prefetch = 0 : i64, scratch_operands = 0 : i64, tpu.core_type = #tpu.core_type<tc>, window_params = [{transform_indices = @transform_0, window_bounds = array<i64: 1, 6, 256>}, {transform_indices = @transform_1, window_bounds = array<i64: 1, 6, 64>}, {pipeline_mode = #tpu.pipeline_mode<synchronous>, transform_indices = @transform_2, window_bounds = array<i64: 9, 256>}, {pipeline_mode = #tpu.pipeline_mode<synchronous>, transform_indices = @transform_3, window_bounds = array<i64: 48, 36>}, {pipeline_mode = #tpu.pipeline_mode<synchronous>, transform_indices = @transform_4, window_bounds = array<i64: 40, 1>}, {transform_indices = @transform_5, window_bounds = array<i64: 1, 4, 256>}]} {
    %c0 = arith.constant 0 : index
    %c0_0 = arith.constant 0 : index
    %c0_1 = arith.constant 0 : index
    %0 = vector.load %arg1[%c0, %c0_0, %c0_1] : memref<1x6x256xf32, #tpu.memory_space<vmem>>, vector<1x6x256xf32>
    %1 = vector.shape_cast %0 : vector<1x6x256xf32> to vector<6x256xf32>
    %c0_2 = arith.constant 0 : index
    %c0_3 = arith.constant 0 : index
    %c0_4 = arith.constant 0 : index
    %2 = vector.load %arg2[%c0_2, %c0_3, %c0_4] : memref<1x6x64xf32, #tpu.memory_space<vmem>>, vector<1x6x64xf32>
    %3 = vector.shape_cast %2 : vector<1x6x64xf32> to vector<6x64xf32>
    %4 = vector.extract_strided_slice %1 {offsets = [0, 0], sizes = [4, 256], strides = [1, 1]} : vector<6x256xf32> to vector<4x256xf32>
    %c17_i32 = arith.constant 17 : i32
    %5 = tpu.dynamic_rotate %4 by %c17_i32 dim 1 : vector<4x256xf32>, i32 -> vector<4x256xf32>
    %c0_5 = arith.constant 0 : index
    %c0_6 = arith.constant 0 : index
    %6 = vector.load %arg3[%c0_5, %c0_6] : memref<9x256xf32, #tpu.memory_space<vmem>>, vector<1x256xf32>
    %7 = vector.broadcast %6 : vector<1x256xf32> to vector<4x256xf32>
    %8 = arith.mulf %5, %7 : vector<4x256xf32>
    %c16_i32 = arith.constant 16 : i32
    %9 = tpu.dynamic_rotate %4 by %c16_i32 dim 1 : vector<4x256xf32>, i32 -> vector<4x256xf32>
    %c1 = arith.constant 1 : index
    %c0_7 = arith.constant 0 : index
    %10 = vector.load %arg3[%c1, %c0_7] : memref<9x256xf32, #tpu.memory_space<vmem>>, vector<1x256xf32>
    %11 = vector.broadcast %10 : vector<1x256xf32> to vector<4x256xf32>
    %12 = arith.mulf %9, %11 : vector<4x256xf32>
    %c15_i32 = arith.constant 15 : i32
    %13 = tpu.dynamic_rotate %4 by %c15_i32 dim 1 : vector<4x256xf32>, i32 -> vector<4x256xf32>
    %c2 = arith.constant 2 : index
    %c0_8 = arith.constant 0 : index
    %14 = vector.load %arg3[%c2, %c0_8] : memref<9x256xf32, #tpu.memory_space<vmem>>, vector<1x256xf32>
    %15 = vector.broadcast %14 : vector<1x256xf32> to vector<4x256xf32>
    %16 = arith.mulf %13, %15 : vector<4x256xf32>
    %c1_i32 = arith.constant 1 : i32
    %17 = tpu.dynamic_rotate %4 by %c1_i32 dim 1 : vector<4x256xf32>, i32 -> vector<4x256xf32>
    %c3 = arith.constant 3 : index
    %c0_9 = arith.constant 0 : index
    %18 = vector.load %arg3[%c3, %c0_9] : memref<9x256xf32, #tpu.memory_space<vmem>>, vector<1x256xf32>
    %19 = vector.broadcast %18 : vector<1x256xf32> to vector<4x256xf32>
    %20 = arith.mulf %17, %19 : vector<4x256xf32>
    %c4 = arith.constant 4 : index
    %c0_10 = arith.constant 0 : index
    %21 = vector.load %arg3[%c4, %c0_10] : memref<9x256xf32, #tpu.memory_space<vmem>>, vector<1x256xf32>
    %22 = vector.broadcast %21 : vector<1x256xf32> to vector<4x256xf32>
    %23 = arith.mulf %4, %22 : vector<4x256xf32>
    %c255_i32 = arith.constant 255 : i32
    %24 = tpu.dynamic_rotate %4 by %c255_i32 dim 1 : vector<4x256xf32>, i32 -> vector<4x256xf32>
    %c5 = arith.constant 5 : index
    %c0_11 = arith.constant 0 : index
    %25 = vector.load %arg3[%c5, %c0_11] : memref<9x256xf32, #tpu.memory_space<vmem>>, vector<1x256xf32>
    %26 = vector.broadcast %25 : vector<1x256xf32> to vector<4x256xf32>
    %27 = arith.mulf %24, %26 : vector<4x256xf32>
    %c241_i32 = arith.constant 241 : i32
    %28 = tpu.dynamic_rotate %4 by %c241_i32 dim 1 : vector<4x256xf32>, i32 -> vector<4x256xf32>
    %c6 = arith.constant 6 : index
    %c0_12 = arith.constant 0 : index
    %29 = vector.load %arg3[%c6, %c0_12] : memref<9x256xf32, #tpu.memory_space<vmem>>, vector<1x256xf32>
    %30 = vector.broadcast %29 : vector<1x256xf32> to vector<4x256xf32>
    %31 = arith.mulf %28, %30 : vector<4x256xf32>
    %c240_i32 = arith.constant 240 : i32
    %32 = tpu.dynamic_rotate %4 by %c240_i32 dim 1 : vector<4x256xf32>, i32 -> vector<4x256xf32>
    %c7 = arith.constant 7 : index
    %c0_13 = arith.constant 0 : index
    %33 = vector.load %arg3[%c7, %c0_13] : memref<9x256xf32, #tpu.memory_space<vmem>>, vector<1x256xf32>
    %34 = vector.broadcast %33 : vector<1x256xf32> to vector<4x256xf32>
    %35 = arith.mulf %32, %34 : vector<4x256xf32>
    %c239_i32 = arith.constant 239 : i32
    %36 = tpu.dynamic_rotate %4 by %c239_i32 dim 1 : vector<4x256xf32>, i32 -> vector<4x256xf32>
    %c8 = arith.constant 8 : index
    %c0_14 = arith.constant 0 : index
    %37 = vector.load %arg3[%c8, %c0_14] : memref<9x256xf32, #tpu.memory_space<vmem>>, vector<1x256xf32>
    %38 = vector.broadcast %37 : vector<1x256xf32> to vector<4x256xf32>
    %39 = arith.mulf %36, %38 : vector<4x256xf32>
    %40 = tpu.concatenate %8, %12, %16, %20, %23, %27, %31, %35, %39 in 0 : vector<4x256xf32>, vector<4x256xf32>, vector<4x256xf32>, vector<4x256xf32>, vector<4x256xf32>, vector<4x256xf32>, vector<4x256xf32>, vector<4x256xf32>, vector<4x256xf32> -> vector<36x256xf32>
    %c0_15 = arith.constant 0 : index
    %c0_16 = arith.constant 0 : index
    %41 = vector.load %arg4[%c0_15, %c0_16] : memref<48x36xf32, #tpu.memory_space<vmem>>, vector<4x36xf32>
    %c0_17 = arith.constant 0 : index
    %c0_18 = arith.constant 0 : index
    %42 = vector.load %arg5[%c0_17, %c0_18] : memref<40x1xf32, #tpu.memory_space<vmem>>, vector<4x1xf32>
    %cst = arith.constant dense<0.000000e+00> : vector<4x256xf32>
    %43 = tpu.matmul %41, %40, %cst {dimension_numbers = #tpu.dot_dimension_numbers<[1], [0], [0], [1], [0, 0, 1, 1], [], []>} : vector<4x36xf32>, vector<36x256xf32>, vector<4x256xf32> -> vector<4x256xf32>
    %44 = vector.broadcast %42 : vector<4x1xf32> to vector<4x256xf32>
    %45 = arith.addf %43, %44 : vector<4x256xf32>
    %cst_19 = arith.constant 0.000000e+00 : f32
    %46 = vector.broadcast %cst_19 : f32 to vector<4x256xf32>
    %47 = arith.maximumf %45, %46 : vector<4x256xf32>
    %c8_20 = arith.constant 8 : index
    %c0_21 = arith.constant 0 : index
    %48 = vector.load %arg4[%c8_20, %c0_21] : memref<48x36xf32, #tpu.memory_space<vmem>>, vector<6x6xf32>
    %c8_22 = arith.constant 8 : index
    %c0_23 = arith.constant 0 : index
    %49 = vector.load %arg5[%c8_22, %c0_23] : memref<40x1xf32, #tpu.memory_space<vmem>>, vector<6x1xf32>
    %cst_24 = arith.constant dense<0.000000e+00> : vector<6x256xf32>
    %50 = tpu.matmul %48, %1, %cst_24 {dimension_numbers = #tpu.dot_dimension_numbers<[1], [0], [0], [1], [0, 0, 1, 1], [], []>} : vector<6x6xf32>, vector<6x256xf32>, vector<6x256xf32> -> vector<6x256xf32>
    %51 = vector.broadcast %49 : vector<6x1xf32> to vector<6x256xf32>
    %52 = arith.addf %50, %51 : vector<6x256xf32>
    %c16 = arith.constant 16 : index
    %c0_25 = arith.constant 0 : index
    %53 = vector.load %arg4[%c16, %c0_25] : memref<48x36xf32, #tpu.memory_space<vmem>>, vector<18x6xf32>
    %cst_26 = arith.constant dense<0.000000e+00> : vector<18x64xf32>
    %54 = tpu.matmul %53, %3, %cst_26 {dimension_numbers = #tpu.dot_dimension_numbers<[1], [0], [0], [1], [0, 0, 1, 1], [], []>} : vector<18x6xf32>, vector<6x64xf32>, vector<18x64xf32> -> vector<18x64xf32>
    %c16_27 = arith.constant 16 : index
    %c0_28 = arith.constant 0 : index
    %55 = vector.load %arg5[%c16_27, %c0_28] : memref<40x1xf32, #tpu.memory_space<vmem>>, vector<6x1xf32>
    %56 = vector.extract_strided_slice %54 {offsets = [0, 0], sizes = [6, 64], strides = [1, 1]} : vector<18x64xf32> to vector<6x64xf32>
    %57 = vector.broadcast %55 : vector<6x1xf32> to vector<6x64xf32>
    %58 = arith.addf %56, %57 : vector<6x64xf32>
    %59 = vector.extract_strided_slice %54 {offsets = [6, 0], sizes = [12, 64], strides = [1, 1]} : vector<18x64xf32> to vector<12x64xf32>
    %cst_29 = arith.constant dense<0.000000e+00> : vector<64x256xf32>
    %60 = tpu.matmul %58, %52, %cst_29 {dimension_numbers = #tpu.dot_dimension_numbers<[0], [0], [1], [1], [0, 1, 1, 1], [], []>} : vector<6x64xf32>, vector<6x256xf32>, vector<64x256xf32> -> vector<64x256xf32>
    %61 = tpu.iota {dimensions = array<i32: 0>} : vector<64x256xi32>
    %62 = arith.sitofp %61 : vector<64x256xi32> to vector<64x256xf32>
    %cst_30 = arith.constant 0.000000e+00 : f32
    %63 = vector.broadcast %cst_30 : f32 to vector<4x256xf32>
    %cst_31 = arith.constant dense<0xFF800000> : vector<256xf32>
    %64 = vector.multi_reduction <maximumf>, %60, %cst_31 [0] : vector<64x256xf32> to vector<256xf32>
    %65 = vector.shape_cast %64 : vector<256xf32> to vector<1x256xf32>
    %66 = vector.broadcast %65 : vector<1x256xf32> to vector<64x256xf32>
    %67 = arith.cmpf oge, %60, %66 : vector<64x256xf32>
    %cst_32 = arith.constant 6.400000e+01 : f32
    %68 = vector.broadcast %cst_32 : f32 to vector<64x256xf32>
    %69 = arith.select %67, %62, %68 : vector<64x256xi1>, vector<64x256xf32>
    %cst_33 = arith.constant dense<0x7F800000> : vector<256xf32>
    %70 = vector.multi_reduction <minimumf>, %69, %cst_33 [0] : vector<64x256xf32> to vector<256xf32>
    %71 = vector.shape_cast %70 : vector<256xf32> to vector<1x256xf32>
    %72 = vector.broadcast %71 : vector<1x256xf32> to vector<64x256xf32>
    %73 = arith.cmpf oeq, %62, %72 : vector<64x256xf32>
    %74 = vector.extract_strided_slice %59 {offsets = [0, 0], sizes = [4, 64], strides = [1, 1]} : vector<12x64xf32> to vector<4x64xf32>
    %75 = arith.extui %73 : vector<64x256xi1> to vector<64x256xi32>
    %76 = arith.sitofp %75 : vector<64x256xi32> to vector<64x256xf32>
    %cst_34 = arith.constant dense<0.000000e+00> : vector<4x256xf32>
    %77 = tpu.matmul %74, %76, %cst_34 {dimension_numbers = #tpu.dot_dimension_numbers<[1], [0], [0], [1], [0, 0, 1, 1], [], []>} : vector<4x64xf32>, vector<64x256xf32>, vector<4x256xf32> -> vector<4x256xf32>
    %78 = arith.addf %63, %77 : vector<4x256xf32>
    %cst_35 = arith.constant -1.000000e+30 : f32
    %79 = vector.broadcast %cst_35 : f32 to vector<64x256xf32>
    %80 = arith.select %73, %79, %60 : vector<64x256xi1>, vector<64x256xf32>
    %cst_36 = arith.constant dense<0xFF800000> : vector<256xf32>
    %81 = vector.multi_reduction <maximumf>, %80, %cst_36 [0] : vector<64x256xf32> to vector<256xf32>
    %82 = vector.shape_cast %81 : vector<256xf32> to vector<1x256xf32>
    %83 = vector.broadcast %82 : vector<1x256xf32> to vector<64x256xf32>
    %84 = arith.cmpf oge, %80, %83 : vector<64x256xf32>
    %cst_37 = arith.constant 6.400000e+01 : f32
    %85 = vector.broadcast %cst_37 : f32 to vector<64x256xf32>
    %86 = arith.select %84, %62, %85 : vector<64x256xi1>, vector<64x256xf32>
    %cst_38 = arith.constant dense<0x7F800000> : vector<256xf32>
    %87 = vector.multi_reduction <minimumf>, %86, %cst_38 [0] : vector<64x256xf32> to vector<256xf32>
    %88 = vector.shape_cast %87 : vector<256xf32> to vector<1x256xf32>
    %89 = vector.broadcast %88 : vector<1x256xf32> to vector<64x256xf32>
    %90 = arith.cmpf oeq, %62, %89 : vector<64x256xf32>
    %91 = vector.extract_strided_slice %59 {offsets = [4, 0], sizes = [4, 64], strides = [1, 1]} : vector<12x64xf32> to vector<4x64xf32>
    %92 = arith.extui %90 : vector<64x256xi1> to vector<64x256xi32>
    %93 = arith.sitofp %92 : vector<64x256xi32> to vector<64x256xf32>
    %cst_39 = arith.constant dense<0.000000e+00> : vector<4x256xf32>
    %94 = tpu.matmul %91, %93, %cst_39 {dimension_numbers = #tpu.dot_dimension_numbers<[1], [0], [0], [1], [0, 0, 1, 1], [], []>} : vector<4x64xf32>, vector<64x256xf32>, vector<4x256xf32> -> vector<4x256xf32>
    %95 = arith.addf %78, %94 : vector<4x256xf32>
    %cst_40 = arith.constant -1.000000e+30 : f32
    %96 = vector.broadcast %cst_40 : f32 to vector<64x256xf32>
    %97 = arith.select %90, %96, %80 : vector<64x256xi1>, vector<64x256xf32>
    %cst_41 = arith.constant dense<0xFF800000> : vector<256xf32>
    %98 = vector.multi_reduction <maximumf>, %97, %cst_41 [0] : vector<64x256xf32> to vector<256xf32>
    %99 = vector.shape_cast %98 : vector<256xf32> to vector<1x256xf32>
    %100 = vector.broadcast %99 : vector<1x256xf32> to vector<64x256xf32>
    %101 = arith.cmpf oge, %97, %100 : vector<64x256xf32>
    %cst_42 = arith.constant 6.400000e+01 : f32
    %102 = vector.broadcast %cst_42 : f32 to vector<64x256xf32>
    %103 = arith.select %101, %62, %102 : vector<64x256xi1>, vector<64x256xf32>
    %cst_43 = arith.constant dense<0x7F800000> : vector<256xf32>
    %104 = vector.multi_reduction <minimumf>, %103, %cst_43 [0] : vector<64x256xf32> to vector<256xf32>
    %105 = vector.shape_cast %104 : vector<256xf32> to vector<1x256xf32>
    %106 = vector.broadcast %105 : vector<1x256xf32> to vector<64x256xf32>
    %107 = arith.cmpf oeq, %62, %106 : vector<64x256xf32>
    %108 = vector.extract_strided_slice %59 {offsets = [8, 0], sizes = [4, 64], strides = [1, 1]} : vector<12x64xf32> to vector<4x64xf32>
    %109 = arith.extui %107 : vector<64x256xi1> to vector<64x256xi32>
    %110 = arith.sitofp %109 : vector<64x256xi32> to vector<64x256xf32>
    %cst_44 = arith.constant dense<0.000000e+00> : vector<4x256xf32>
    %111 = tpu.matmul %108, %110, %cst_44 {dimension_numbers = #tpu.dot_dimension_numbers<[1], [0], [0], [1], [0, 0, 1, 1], [], []>} : vector<4x64xf32>, vector<64x256xf32>, vector<4x256xf32> -> vector<4x256xf32>
    %112 = arith.addf %95, %111 : vector<4x256xf32>
    %c24 = arith.constant 24 : index
    %c0_45 = arith.constant 0 : index
    %113 = vector.load %arg5[%c24, %c0_45] : memref<40x1xf32, #tpu.memory_space<vmem>>, vector<4x1xf32>
    %114 = vector.broadcast %113 : vector<4x1xf32> to vector<4x256xf32>
    %115 = arith.addf %112, %114 : vector<4x256xf32>
    %cst_46 = arith.constant 0.000000e+00 : f32
    %116 = vector.broadcast %cst_46 : f32 to vector<4x256xf32>
    %117 = arith.maximumf %115, %116 : vector<4x256xf32>
    %c40 = arith.constant 40 : index
    %c0_47 = arith.constant 0 : index
    %118 = vector.load %arg4[%c40, %c0_47] : memref<48x36xf32, #tpu.memory_space<vmem>>, vector<4x8xf32>
    %c32 = arith.constant 32 : index
    %c0_48 = arith.constant 0 : index
    %119 = vector.load %arg5[%c32, %c0_48] : memref<40x1xf32, #tpu.memory_space<vmem>>, vector<4x1xf32>
    %120 = tpu.concatenate %47, %117 in 0 : vector<4x256xf32>, vector<4x256xf32> -> vector<8x256xf32>
    %cst_49 = arith.constant dense<0.000000e+00> : vector<4x256xf32>
    %121 = tpu.matmul %118, %120, %cst_49 {dimension_numbers = #tpu.dot_dimension_numbers<[1], [0], [0], [1], [0, 0, 1, 1], [], []>} : vector<4x8xf32>, vector<8x256xf32>, vector<4x256xf32> -> vector<4x256xf32>
    %122 = vector.broadcast %119 : vector<4x1xf32> to vector<4x256xf32>
    %123 = arith.addf %121, %122 : vector<4x256xf32>
    %c0_50 = arith.constant 0 : index
    %c0_51 = arith.constant 0 : index
    %c0_52 = arith.constant 0 : index
    %124 = vector.load %arg6[%c0_50, %c0_51, %c0_52] : memref<1x4x256xf32, #tpu.memory_space<vmem>>, vector<1x4x256xf32>
    %125 = vector.shape_cast %124 : vector<1x4x256xf32> to vector<4x256xf32>
    %126 = vector.shape_cast %123 : vector<4x256xf32> to vector<1x4x256xf32>
    tpu.vector_store %arg6[%c0_50, %c0_51, %c0_52], %126 {strides = array<i32>} : memref<1x4x256xf32, #tpu.memory_space<vmem>>, vector<1x4x256xf32>,
    return
  }
  func.func @transform_0(%arg0: i32) -> (i32, i32, i32) {
    %c0_i32 = arith.constant 0 : i32
    %c0_i32_0 = arith.constant 0 : i32
    %c0_i32_1 = arith.constant 0 : i32
    return %arg0, %c0_i32, %c0_i32_0 : i32, i32, i32
  }
  func.func @transform_1(%arg0: i32) -> (i32, i32, i32) {
    %c0_i32 = arith.constant 0 : i32
    %c0_i32_0 = arith.constant 0 : i32
    %c0_i32_1 = arith.constant 0 : i32
    return %arg0, %c0_i32, %c0_i32_0 : i32, i32, i32
  }
  func.func @transform_2(%arg0: i32) -> (i32, i32) {
    %c0_i32 = arith.constant 0 : i32
    %c0_i32_0 = arith.constant 0 : i32
    %c0_i32_1 = arith.constant 0 : i32
    return %c0_i32, %c0_i32_0 : i32, i32
  }
  func.func @transform_3(%arg0: i32) -> (i32, i32) {
    %c0_i32 = arith.constant 0 : i32
    %c0_i32_0 = arith.constant 0 : i32
    %c0_i32_1 = arith.constant 0 : i32
    return %c0_i32, %c0_i32_0 : i32, i32
  }
  func.func @transform_4(%arg0: i32) -> (i32, i32) {
    %c0_i32 = arith.constant 0 : i32
    %c0_i32_0 = arith.constant 0 : i32
    %c0_i32_1 = arith.constant 0 : i32
    return %c0_i32, %c0_i32_0 : i32, i32
  }
  func.func @transform_5(%arg0: i32) -> (i32, i32, i32) {
    %c0_i32 = arith.constant 0 : i32
    %c0_i32_0 = arith.constant 0 : i32
    %c0_i32_1 = arith.constant 0 : i32
    return %arg0, %c0_i32, %c0_i32_0 : i32, i32, i32
  }
}

</mosaic_0001>

<bundles_post_ra>
// kernel: conv2d_convnn_attn_spatial_branching.1
= control target key start
LH: loop header
LB: loop body
LE: loop exit
PB: predicated region body
PF: predicated region fallthrough
CT: control target
= control target key end

     0   :  { %s2004_s18 = smov 0   ;;  %s2829_s0 = inlined_call_operand.vmem [shape: f32[2,6,256], index: 0, kind: input, shape index: {}]   ;;  %s2830_s1 = inlined_call_operand.vmem [shape: f32[2,6,64], index: 1, kind: input, shape index: {}]   ;;  %s2831_s2 = inlined_call_operand.vmem [shape: f32[9,256], index: 2, kind: input, shape index: {}]   ;;  %s2832_s3 = inlined_call_operand.vmem [shape: f32[48,36], index: 3, kind: input, shape index: {}]   ;;  %s2833_s4 = inlined_call_operand.vmem [shape: f32[40,1], index: 4, kind: input, shape index: {}]   ;;  %s2834_s5 = inlined_call_operand.vmem [shape: f32[2,4,256], index: 5, kind: output, shape index: {}]  }
   0x1 LB: > { %s1775_s19 = sadd.s32 4294967295, %s1960_s18   ;;  %p1779_p0 = scmp.ge.s32.totalorder %s1960_s18, 1  ;;  %s1960_s18 = sphi %s2004_s18, %s15_s18  }
   0x2   : > { %p196_p1 = scmp.lt.s32.totalorder %s1960_s18, 3 }
   0x4   : > { %p197_p2 = pnand %p1779_p0, %p196_p1 }
   0x5   : > { %p228_p3 = scmp.lt.s32.totalorder (!%p197_p2), %s1775_s19, 1  ;;  %s1964_s7 = smov (!%p197_p2), 112  }
   0x6   : > { %200 = sbr.rel (%p197_p2) target bundleno = 1129 (0x469), region = 40  ;;  %s1966_s10 = smov (!%p197_p2), 111  }
   0x7   : > { %s1967_s13 = smov (!%p197_p2), 127   ;;  %s1968_s14 = smov (!%p197_p2), 113  }
   0x8   : > { %s1969_s15 = smov (!%p197_p2), 1   ;;  %s1970_s16 = smov (!%p197_p2), 16  }
   0x9   : > { %s1971_s17 = smov (!%p197_p2), 15   ;;  %s1972_s20 = smov (!%p197_p2), 17  }
   0xb   : > { %v744_v0 = vld [vmem:[%s2833_s4 + $0x10] sm:$0x3f]  ;;  %v1962_v1 = vmov 0   ;;  %v1963_v2 = vmov 0.0   ;;  %s2869_s19 = smov (!%p228_p3, %s1775_s19), 1  ;;  %vm571_vm0 = vcmask 1045504   ;;  %v249_v13 = vlaneseq }
   0xc   : > { %1952 = vset.pattern.permute.xlu0 %v1962_v1  ;;  %642 = vmatprep.mubr.f32.mxu1 %v1963_v2  ;;  %s1915_s22 = sshll.u32 %s2869_s19, 4  ;;  %s1782_s23 = sshll.u32 %s2869_s19, 3  ;;  %v560_v3 = vld [vmem:[%s2832_s3 + $0x8] sm:$0x3f]  ;;  %vm567_vm1 = vcmask 48128   ;;  %vm1965_vm2 = vmmov 0  }
   0xd   : > { %747 = vperm.xlu0 %1952, %v744_v0   ;;  %1953 = vset.pattern.permute.xlu1 %v1962_v1  ;;  %s232_s26 = scalar_lea.vmem %s2829_s0, %s1915_s22  ;;  %s236_s6 = scalar_lea.vmem %s2830_s1, %s1782_s23  ;;  %v649_v7 = vld [vmem:[%s2832_s3 + $0x10] sm:$0xff]  ;;  %v650_v8 = vld [vmem:[%s2832_s3 + $0x18] sm:$0xff]  ;;  %v561_v9 = vld [vmem:[%s2833_s4 + $0x8] sm:$0x3f]  ;;  %v2082_v15 = vshrl.u32 %v249_v13, 7  ;;  %v2086_v18 = vand.u32 127, %v249_v13 }
   0xe   : > { %551 = vmatprep.mubr.f32.mxu0 %v1963_v2  ;;  %v2032_v4 = vld [vmem:[%s232_s26 + $0x8] sm:$0x3f]  ;;  %v2034_v5 = vld [vmem:[%s232_s26] sm:$0x3f]  ;;  %v1603_v10 = vld [vmem:[%s2833_s4 + $0x18] sm:$0xf]  ;;  %s241_s9 = scalar_lea.vmem %s2834_s5, %s1782_s23 }
   0xf   : > { %1796 = vmatprep.subr.msk.mxu1 %vm571_vm0, %v2032_v4  ;;  %v244_v6 = vld [vmem:[%s236_s6] sm:$0x3f]  ;;  %395 = vrot.lane.b32.xlu1 %v2032_v4, %s1964_s7  ;;  %v2089_v19 = vsub.s32 0, %v2082_v15  ;;  %v2092_v20 = vsub.s32 1, %v2082_v15  ;;  %vm397_vm3 = vcmp.lt.s32.totalorder %v2086_v18, 112  ;;  %vm419_vm4 = vcmp.lt.s32.totalorder %v2086_v18, 111 }
  0x10   : > { %1797 = vmatpush1.msk.msra.mxu1 %vm571_vm0, %v2034_v5  ;;  %v471_v11 = vld [vmem:[%s2833_s4] sm:$0xf]  ;;  %v1792_v21 = vld [vmem:[%s2831_s2 + $0x10] ss:$8 sm:$0x3]  ;;  %vm353_vm5 = vcmp.lt.s32.totalorder %v2086_v18, 127 }
  0x11   : > { %393 = vrot.lane.b32.xlu0 %v2034_v5, %s1964_s7  ;;  %1798 = vmatmul.mubr.msk.f32.vlgmr.msra.gmra.mxu1 %vm567_vm1, %v560_v3  ;;  %v1614_v12 = vld [vmem:[%s2833_s4 + $0x20] sm:$0xf]  ;;  %v1791_v24 = vld [vmem:[%s2831_s2 + $0x7] ss:$8 sm:$0x3]  ;;  %v428_v25 = vrot.slane %v1792_v21, %v2089_v19  ;;  %v432_v26 = vrot.slane %v1792_v21, %v2092_v20  ;;  %vm2835_vm6 = vcmask 1043456  }
  0x12   : > { %1921 = vmatprep.subr.mxu1 %v1963_v2  ;;  %1923 = vmatprep.mubr.msk.f32.mxu1 %vm1965_vm2, %v1963_v2  ;;  %v1789_v27 = vld [vmem:[%s2831_s2 + $0x5] ss:$8 sm:$0x3]  ;;  %v406_v28 = vrot.slane %v1791_v24, %v2089_v19  ;;  %v410_v29 = vrot.slane %v1791_v24, %v2092_v20  ;;  %v1788_v36 = vld [vmem:[%s2831_s2 + $0x4] ss:$8 sm:$0x3] }
  0x13   : > { %1922 = vmatpush3.msk.msra.mxu1 %vm571_vm0, %v244_v6  ;;  %415 = vrot.lane.b32.xlu1 %v2034_v5, %s1966_s10  ;;  %v362_v38 = vrot.slane %v1789_v27, %v2089_v19  ;;  %v366_v39 = vrot.slane %v1789_v27, %v2092_v20  ;;  %v1790_v41 = vld [vmem:[%s2831_s2 + $0x6] ss:$8 sm:$0x3]  ;;  %v344_v46 = vrot.slane %v1788_v36, %v2092_v20  ;;  %vm375_vm7 = vcmp.lt.s32.totalorder %v2086_v18, 113 }
  0x14   : > { %v340_v49 = vrot.slane %v1788_v36, %v2089_v19  ;;  %v384_v52 = vrot.slane %v1790_v41, %v2089_v19  ;;  %v388_v53 = vrot.slane %v1790_v41, %v2092_v20  ;;  %v1787_v58 = vld [vmem:[%s2831_s2 + $0x3] ss:$8 sm:$0x3]  ;;  %vm316_vm8 = vcmp.lt.s32.totalorder %v2086_v18, 1 }
  0x15   : > { %417 = vrot.lane.b32.xlu0 %v2032_v4, %s1966_s10  ;;  %1924 = vmatmul.mubr.msk.f32.vlgmr.msra.gmra.mxu1 %vm567_vm1, %v649_v7  ;;  %v348_v59 = vmul.f32 %v344_v46, %v2032_v4  ;;  %v325_v6 = vrot.slane %v1787_v58, %v2089_v19  ;;  %v329_v7 = vrot.slane %v1787_v58, %v2092_v20  ;;  %vm272_vm9 = vcmp.lt.s32.totalorder %v2086_v18, 16 }
  0x16   : > { %1926 = vmatprep.mubr.msk.f32.mxu1 %vm1965_vm2, %v1963_v2  ;;  %v347_v63 = vmul.f32 %v340_v49, %v2034_v5  ;;  %vm294_vm10 = vcmp.lt.s32.totalorder %v2086_v18, 15  ;;  %vm251_vm11 = vcmp.lt.s32.totalorder %v2086_v18, 17  ;;  %vm477_vm12 = vcmask 293888  }
  0x17   : > { %349 = vrot.lane.b32.xlu1 %v2034_v5, %s1967_s13  ;;  %vm1300_vm13 = vcmask 1041408  }
  0x19   : > { %351 = vrot.lane.b32.xlu0 %v2032_v4, %s1967_s13  ;;  %1927 = vmatmul.mubr.msk.f32.gmra.mxu1 %vm567_vm1, %v650_v8 }
  0x1a   : > { %1929 = vmatprep.mubr.msk.f32.mxu1 %vm1965_vm2, %v1963_v2 }
  0x1b   : > { %371 = vrot.lane.b32.xlu1 %v2034_v5, %s1968_s14 }
  0x1d   : > { %373 = vrot.lane.b32.xlu0 %v2032_v4, %s1968_s14 }
  0x1f   : > { %312 = vrot.lane.b32.xlu1 %v2034_v5, %s1969_s15 }
  0x21   : > { %314 = vrot.lane.b32.xlu0 %v2032_v4, %s1969_s15 }
  0x23   : > { %268 = vrot.lane.b32.xlu1 %v2034_v5, %s1970_s16 }
  0x25   : > { %270 = vrot.lane.b32.xlu0 %v2032_v4, %s1970_s16 }
  0x27   : > { %290 = vrot.lane.b32.xlu1 %v2034_v5, %s1971_s17 }
  0x29   : > { %292 = vrot.lane.b32.xlu0 %v2032_v4, %s1971_s17 }
  0x2b   : > { %245 = vrot.lane.b32.xlu1 %v2034_v5, %s1972_s20  ;;  %v1785_v5 = vld [vmem:[%s2831_s2 + $0x1] ss:$8 sm:$0x3] }
  0x2d   : > { %247 = vrot.lane.b32.xlu0 %v2032_v4, %s1972_s20 }
  0x2f   : > { %564 = vperm.xlu1 %1953, %v561_v9  }
  0x33   : > { %1606 = vperm.xlu1 %1953, %v1603_v10  }
  0x37   : > { %474 = vperm.xlu1 %1953, %v471_v11  }
  0x3b   : > { %1625 = vperm.xlu1 %1953, %v1614_v12  }
  0x81   : > { %v396_v14 = vpop.permute.xlu1 %395 }
  0x85   : > { %v416_v17 = vpop.permute.xlu1 %415 }
  0x88   : > { %v2084_v16 = vpop.permute.xlu0 %747 }
  0x89   : > { %v350_v23 = vpop.permute.xlu1 %349 }
  0x8c   : > { %v394_v22 = vpop.permute.xlu0 %393 }
  0x8d   : > { %v372_v31 = vpop.permute.xlu1 %371  ;;  %v398_v32 = vsel %vm397_vm3, %v394_v22, %v396_v14  ;;  %v399_v33 = vsel %vm397_vm3, %v396_v14, %v394_v22  ;;  %v1786_v14 = vld [vmem:[%s2831_s2 + $0x2] ss:$8 sm:$0x3]  ;;  %v281_v22 = vrot.slane %v1785_v5, %v2089_v19 }
  0x8e   : > { %v413_v42 = vmul.f32 %v406_v28, %v398_v32  ;;  %v414_v43 = vmul.f32 %v410_v29, %v399_v33  ;;  %v303_v28 = vrot.slane %v1786_v14, %v2089_v19  ;;  %v307_v29 = vrot.slane %v1786_v14, %v2092_v20 }
  0x90   : > { %v418_v30 = vpop.permute.xlu0 %417  ;;  %v457_v54 = vrot.slane %v413_v42, 4  ;;  %v458_v55 = vrot.slane %v414_v43, 4 }
  0x91   : > { %v420_v34 = vsel %vm419_vm4, %v416_v17, %v418_v30  ;;  %v421_v35 = vsel %vm419_vm4, %v418_v30, %v416_v17  ;;  %v313_v45 = vpop.permute.xlu1 %312  ;;  %v254_v30 = vld [vmem:[%s2831_s2] ss:$8 sm:$0x3] }
  0x92   : > { %v435_v37 = vmul.f32 %v428_v25, %v420_v34  ;;  %v436_v40 = vmul.f32 %v432_v26, %v421_v35  ;;  %v259_v41 = vrot.slane %v254_v30, %v2089_v19  ;;  %v263_v42 = vrot.slane %v254_v30, %v2092_v20  ;;  %v470_v19 = vld [vmem:[%s2832_s3] sm:$0xf] }
  0x94   : > { %v352_v44 = vpop.permute.xlu0 %351  ;;  %1793 = vmatprep.subr.msk.mxu0 %vm2835_vm6, %v436_v40 }
  0x95   : > { %v354_v47 = vsel %vm353_vm5, %v350_v23, %v352_v44  ;;  %v355_v48 = vsel %vm353_vm5, %v352_v44, %v350_v23  ;;  %1794 = vmatpush1.msk.msra.mxu0 %vm2835_vm6, %v435_v37  ;;  %v269_v3 = vpop.permute.xlu1 %268  ;;  %v285_v23 = vrot.slane %v1785_v5, %v2092_v20 }
  0x96   : > { %v369_v50 = vmul.f32 %v362_v38, %v354_v47  ;;  %v370_v51 = vmul.f32 %v366_v39, %v355_v48 }
  0x98   : > { %v452_v56 = vrot.slane %v370_v51, 4  ;;  %v374_v57 = vpop.permute.xlu0 %373  ;;  %v451_v60 = vrot.slane %v369_v50, 4 }
  0x99   : > { %v376_v61 = vsel %vm375_vm7, %v372_v31, %v374_v57  ;;  %v377_v62 = vsel %vm375_vm7, %v374_v57, %v372_v31  ;;  %v291_v25 = vpop.permute.xlu1 %290 }
  0x9a   : > { %v391_v0 = vmul.f32 %v384_v52, %v376_v61  ;;  %v392_v1 = vmul.f32 %v388_v53, %v377_v62  ;;  %v467_v4 = vsel %vm2835_vm6, %v348_v59, %v452_v56  ;;  %v466_v13 = vsel %vm2835_vm6, %v347_v63, %v451_v60 }
  0x9c   : > { %v315_v8 = vpop.permute.xlu0 %314  ;;  %v469_v9 = vsel %vm2835_vm6, %v392_v1, %v458_v55  ;;  %v468_v10 = vsel %vm2835_vm6, %v391_v0, %v457_v54 }
  0x9d   : > { %v317_v11 = vsel %vm316_vm8, %v313_v45, %v315_v8  ;;  %v318_v12 = vsel %vm316_vm8, %v315_v8, %v313_v45  ;;  %511 = vmatprep.subr.mxu0 %v469_v9  ;;  %v246_v40 = vpop.permute.xlu1 %245 }
  0x9e   : > { %512 = vmatpush1.msra.mxu0 %v468_v10  ;;  %v332_v17 = vmul.f32 %v325_v6, %v318_v12  ;;  %v333_v21 = vmul.f32 %v329_v7, %v317_v11 }
  0x9f   : > { %513 = vmatprep.subr.mxu0 %v467_v4 }
  0xa0   : > { %v271_v24 = vpop.permute.xlu0 %270  ;;  %514 = vmatpush1.msra.mxu0 %v466_v13  ;;  %v445_v31 = vrot.slane %v332_v17, 4  ;;  %v446_v32 = vrot.slane %v333_v21, 4 }
  0xa1   : > { %v273_v26 = vsel %vm272_vm9, %v269_v3, %v271_v24  ;;  %v274_v27 = vsel %vm272_vm9, %v271_v24, %v269_v3 }
  0xa2   : > { %v288_v33 = vmul.f32 %v281_v22, %v274_v27  ;;  %v289_v34 = vmul.f32 %v285_v23, %v273_v26 }
  0xa4   : > { %v293_v35 = vpop.permute.xlu0 %292  ;;  %v439_v43 = vrot.slane %v288_v33, 4  ;;  %v440_v44 = vrot.slane %v289_v34, 4 }
  0xa5   : > { %v295_v36 = vsel %vm294_vm10, %v291_v25, %v293_v35  ;;  %v296_v37 = vsel %vm294_vm10, %v293_v35, %v291_v25 }
  0xa6   : > { %v310_v38 = vmul.f32 %v303_v28, %v296_v37  ;;  %v311_v39 = vmul.f32 %v307_v29, %v295_v36 }
  0xa8   : > { %v248_v45 = vpop.permute.xlu0 %247  ;;  %v465_v46 = vsel %vm2835_vm6, %v311_v39, %v446_v32  ;;  %v464_v47 = vsel %vm2835_vm6, %v310_v38, %v445_v31 }
  0xa9   : > { %v252_v48 = vsel %vm251_vm11, %v246_v40, %v248_v45  ;;  %v253_v49 = vsel %vm251_vm11, %v248_v45, %v246_v40  ;;  %515 = vmatprep.subr.mxu0 %v465_v46 }
  0xaa   : > { %v266_v50 = vmul.f32 %v259_v41, %v253_v49  ;;  %v267_v51 = vmul.f32 %v263_v42, %v252_v48  ;;  %516 = vmatpush1.msra.mxu0 %v464_v47  ;;  %v565_v53 = vpop.permute.xlu1 %564 }
  0xac   : > { %v463_v18 = vsel %vm2835_vm6, %v267_v51, %v440_v44  ;;  %v462_v52 = vsel %vm2835_vm6, %v266_v50, %v439_v43 }
  0xad   : > { %517 = vmatprep.subr.mxu0 %v463_v18  ;;  %v928_v18 = vadd.s32 8, %v2082_v15 }
  0xae   : > { %518 = vmatpush1.msra.mxu0 %v462_v52  ;;  %v929_v52 = vadd.s32 16, %v2082_v15 }
  0xaf   : > { %1795 = vmatmul.mubr.msk.f32.vlgmr.msra.gmra.mxu0 %vm477_vm12, %v470_v19  ;;  %v930_v19 = vadd.s32 24, %v2082_v15 }
  0xb0   : > { %877 = vmatprep.mubr.f32.mxu0 %v1963_v2 }
  0xd1   : > { %v644_v20 = vpop.f32.mrf.mxu1 }
  0xd2   : > { %v645_v56 = vadd.f32 %v644_v20, %v565_v53 }
  0xd3   : > { %v646_v54 = vpop.f32.mrf.mxu1 }
  0xd4   : > { %v647_v55 = vadd.f32 %v646_v54, %v565_v53  ;;  %v931_v54 = vadd.s32 32, %v2082_v15 }
  0xd5   : > { %v730_v57 = vpop.f32.mrf.mxu1 }
  0xd6   : > { %v750_v58 = vadd.f32 %v2084_v16, %v730_v57  ;;  %1803 = vmatprep.subr.msk.mxu0 %vm571_vm0, %v647_v55  ;;  %v1301_v61 = vrot.slane %v730_v57, 6  ;;  %v651_v16 = vld [vmem:[%s2832_s3 + $0x20] sm:$0x3]  ;;  %v932_v55 = vadd.s32 40, %v2082_v15 }
  0xd7   : > { %v1925_v59 = vpop.f32.mrf.mxu1  ;;  %1804 = vmatpush1.msk.msra.mxu0 %vm571_vm0, %v645_v56  ;;  %1930 = vmatmul.mubr.msk.f32.gmra.mxu1 %vm567_vm1, %v651_v16  ;;  %v2264_v16 = vcvt.s32.f32 %v930_v19 }
  0xd8   : > { %751 = vxpose.xlu0.b32.start.end [1/1] (short) (narrow) %v750_v58, 64  ;;  %1292 = vmatprep.mubr.f32.mxu1 %v1963_v2  ;;  %v933_v58 = vadd.s32 48, %v2082_v15  ;;  %v2258_v59 = vcvt.s32.f32 %v2082_v15 }
  0xd9   : > { %v2170_v60 = vpop.f32.mrf.mxu1 }
  0xda   : > { %v1302_v62 = vrot.slane %v2170_v60, 6 }
  0xdb   : > { %v1928_v63 = vpop.f32.mrf.mxu1 }
  0xdc   : > { %v2176_v0 = vsel %vm1300_vm13, %v1301_v61, %v1302_v62  ;;  %v2260_v61 = vcvt.s32.f32 %v928_v18  ;;  %v2262_v63 = vcvt.s32.f32 %v929_v52 }
 0x154   : > { %v767_v1 = vpop.trf.xlu0 }
 0x155   : > { %1805 = vmatmul.mubr.msk.f32.vlgmr.msra.gmra.mxu0 %vm567_vm1, %v767_v1 }
 0x156   : > { %883 = vmatprep.mubr.f32.mxu0 %v1963_v2 }
 0x158   : > { %v768_v3 = vpop.trf.xlu0 }
 0x159   : > { %1806 = vmatmul.mubr.msk.f32.gmra.mxu0 %vm567_vm1, %v768_v3  ;;  %v934_v3 = vadd.s32 56, %v2082_v15 }
 0x15a   : > { %889 = vmatprep.mubr.f32.mxu0 %v1963_v2 }
 0x15c   : > { %v769_v6 = vpop.trf.xlu0 }
 0x15d   : > { %1807 = vmatmul.mubr.msk.f32.gmra.mxu0 %vm567_vm1, %v769_v6  ;;  %v2267_v6 = vcvt.s32.f32 %v931_v54 }
 0x15e   : > { %895 = vmatprep.mubr.f32.mxu0 %v1963_v2 }
 0x160   : > { %v770_v7 = vpop.trf.xlu0 }
 0x161   : > { %1808 = vmatmul.mubr.msk.f32.gmra.mxu0 %vm567_vm1, %v770_v7  ;;  %v2269_v7 = vcvt.s32.f32 %v932_v55 }
 0x162   : > { %901 = vmatprep.mubr.f32.mxu0 %v1963_v2 }
 0x164   : > { %v771_v8 = vpop.trf.xlu0 }
 0x165   : > { %1809 = vmatmul.mubr.msk.f32.gmra.mxu0 %vm567_vm1, %v771_v8 }
 0x166   : > { %907 = vmatprep.mubr.f32.mxu0 %v1963_v2 }
 0x168   : > { %v772_v9 = vpop.trf.xlu0 }
 0x169   : > { %1810 = vmatmul.mubr.msk.f32.gmra.mxu0 %vm567_vm1, %v772_v9  ;;  %v2275_v9 = vcvt.s32.f32 %v933_v58 }
 0x16a   : > { %913 = vmatprep.mubr.f32.mxu0 %v1963_v2 }
 0x16c   : > { %v773_v10 = vpop.trf.xlu0 }
 0x16d   : > { %1811 = vmatmul.mubr.msk.f32.gmra.mxu0 %vm567_vm1, %v773_v10 }
 0x16e   : > { %919 = vmatprep.mubr.f32.mxu0 %v1963_v2 }
 0x16f   : > { %v2199_v11 = vpop.f32.mrf.mxu0 }
 0x170   : > { %v774_v4 = vpop.trf.xlu0 }
 0x171   : > { %1812 = vmatmul.mubr.msk.f32.gmra.mxu0 %vm567_vm1, %v774_v4  ;;  %v2201_v12 = vpop.f32.mrf.mxu0 }
 0x172   : > { %1594 = vmatprep.mubr.f32.mxu0 %v1963_v2 }
 0x215   : > { %v2203_v5 = vpop.f32.mrf.mxu0 }
 0x217   : > { %v2205_v13 = vpop.f32.mrf.mxu0 }
 0x219   : > { %v2207_v14 = vpop.f32.mrf.mxu0 }
 0x21b   : > { %v2209_v17 = vpop.f32.mrf.mxu0 }
 0x21d   : > { %v2211_v21 = vpop.f32.mrf.mxu0 }
 0x21e   : > { %v943_v30 = vmax.f32 %v2203_v5, %v2211_v21 }
 0x21f   : > { %v2213_v22 = vpop.f32.mrf.mxu0 }
 0x220   : > { %v956_v33 = vmax.f32 %v2205_v13, %v2213_v22 }
 0x221   : > { %v2215_v23 = vpop.f32.mrf.mxu0 }
 0x222   : > { %v944_v31 = vmax.f32 %v2207_v14, %v2215_v23 }
 0x223   : > { %v2217_v24 = vpop.f32.mrf.mxu0 }
 0x224   : > { %v957_v34 = vmax.f32 %v2209_v17, %v2217_v24 }
 0x225   : > { %v2219_v25 = vpop.f32.mrf.mxu0 }
 0x226   : > { %v945_v35 = vmax.f32 %v943_v30, %v2219_v25 }
 0x227   : > { %v2221_v26 = vpop.f32.mrf.mxu0 }
 0x228   : > { %v958_v38 = vmax.f32 %v956_v33, %v2221_v26 }
 0x229   : > { %v2223_v27 = vpop.f32.mrf.mxu0 }
 0x22a   : > { %v946_v36 = vmax.f32 %v944_v31, %v2223_v27  ;;  %v2284_v31 = vcvt.s32.f32 %v934_v3 }
 0x22b   : > { %v2225_v28 = vpop.f32.mrf.mxu0 }
 0x22c   : > { %v959_v39 = vmax.f32 %v957_v34, %v2225_v28 }
 0x22d   : > { %v2227_v29 = vpop.f32.mrf.mxu0 }
 0x22e   : > { %v947_v40 = vmax.f32 %v945_v35, %v2227_v29 }
 0x22f   : > { %v2233_v32 = vpop.f32.mrf.mxu0 }
 0x230   : > { %v960_v43 = vmax.f32 %v958_v38, %v2233_v32 }
 0x231   : > { %v2241_v37 = vpop.f32.mrf.mxu0 }
 0x232   : > { %v948_v41 = vmax.f32 %v946_v36, %v2241_v37  ;;  %v740_v36 = vpop.f32.mrf.mxu1 }
 0x233   : > { %v2247_v42 = vpop.f32.mrf.mxu0 }
 0x234   : > { %v949_v44 = vmax.f32 %v947_v40, %v948_v41  ;;  %v961_v45 = vmax.f32 %v959_v39, %v2247_v42 }
 0x236   : > { %v950_v46 = vrot.slane %v949_v44, 4  ;;  %v962_v47 = vmax.f32 %v960_v43, %v961_v45 }
 0x238   : > { %v951_v48 = vmax.f32 %v949_v44, %v950_v46  ;;  %v963_v49 = vrot.slane %v962_v47, 4  ;;  %v1931_v44 = vpop.f32.mrf.mxu1  ;;  %v1526_v46 = vrot.slane %v740_v36, 6 }
 0x23a   : > { %v952_v50 = vrot.slane %v951_v48, 2  ;;  %v964_v51 = vmax.f32 %v962_v47, %v963_v49 }
 0x23c   : > { %v953_v20 = vmax.f32 %v951_v48, %v952_v50  ;;  %v965_v53 = vrot.slane %v964_v51, 2 }
 0x23e   : > { %v954_v56 = vrot.slane %v953_v20, 1  ;;  %v966_v57 = vmax.f32 %v964_v51, %v965_v53  ;;  %v2306_v53 = vsel %vm1300_vm13, %v1302_v62, %v1526_v46 }
 0x240   : > { %v955_v1 = vmax.f32 %v953_v20, %v954_v56  ;;  %v967_v8 = vrot.slane %v966_v57, 1 }
 0x242   : > { %vm969_vm14 = vcmp.ge.f32.partialorder %v2203_v5, %v955_v1  ;;  %vm971_vm15 = vcmp.ge.f32.partialorder %v2207_v14, %v955_v1  ;;  %vm973_vm0 = vcmp.ge.f32.partialorder %v2211_v21, %v955_v1  ;;  %vm975_vm1 = vcmp.ge.f32.partialorder %v2215_v23, %v955_v1 }
 0x243   : > { %vm977_vm2 = vcmp.ge.f32.partialorder %v2219_v25, %v955_v1  ;;  %vm979_vm3 = vcmp.ge.f32.partialorder %v2223_v27, %v955_v1  ;;  %vm981_vm4 = vcmp.ge.f32.partialorder %v2227_v29, %v955_v1  ;;  %v985_v15 = vsel %vm969_vm14, %v2258_v59, 64.0 }
 0x244   : > { %v987_v10 = vsel %vm971_vm15, %v2260_v61, 64.0  ;;  %v989_v4 = vsel %vm973_vm0, %v2262_v63, 64.0  ;;  %v991_v30 = vsel %vm975_vm1, %v2264_v16, 64.0  ;;  %vm983_vm5 = vcmp.ge.f32.partialorder %v2241_v37, %v955_v1 }
 0x245   : > { %v1001_v33 = vmin.f32 %v985_v15, %v989_v4  ;;  %v1002_v34 = vmin.f32 %v987_v10, %v991_v30  ;;  %v968_v35 = vmax.f32 %v966_v57, %v967_v8  ;;  %v993_v38 = vsel %vm977_vm2, %v2267_v6, 64.0 }
 0x246   : > { %v995_v39 = vsel %vm979_vm3, %v2269_v7, 64.0  ;;  %v997_v40 = vsel %vm981_vm4, %v2275_v9, 64.0  ;;  %v999_v45 = vsel %vm983_vm5, %v2284_v31, 64.0 }
 0x247   : > { %v1003_v41 = vmin.f32 %v1001_v33, %v993_v38  ;;  %v1004_v43 = vmin.f32 %v1002_v34, %v995_v39  ;;  %vm970_vm7 = vcmp.ge.f32.partialorder %v2205_v13, %v968_v35  ;;  %vm972_vm8 = vcmp.ge.f32.partialorder %v2209_v17, %v968_v35 }
 0x248   : > { %vm974_vm9 = vcmp.ge.f32.partialorder %v2213_v22, %v968_v35  ;;  %vm976_vm10 = vcmp.ge.f32.partialorder %v2217_v24, %v968_v35  ;;  %vm978_vm11 = vcmp.ge.f32.partialorder %v2221_v26, %v968_v35  ;;  %vm980_vm12 = vcmp.ge.f32.partialorder %v2225_v28, %v968_v35 }
 0x249   : > { %v1005_v47 = vmin.f32 %v1003_v41, %v997_v40  ;;  %v1006_v48 = vmin.f32 %v1004_v43, %v999_v45  ;;  %v986_v49 = vsel %vm970_vm7, %v2258_v59, 64.0  ;;  %v988_v50 = vsel %vm972_vm8, %v2260_v61, 64.0 }
 0x24a   : > { %v990_v51 = vsel %vm974_vm9, %v2262_v63, 64.0  ;;  %v992_v18 = vsel %vm976_vm10, %v2264_v16, 64.0  ;;  %vm982_vm14 = vcmp.ge.f32.partialorder %v2233_v32, %v968_v35  ;;  %vm984_vm15 = vcmp.ge.f32.partialorder %v2247_v42, %v968_v35 }
 0x24b   : > { %v1007_v52 = vmin.f32 %v1005_v47, %v1006_v48  ;;  %v1014_v19 = vmin.f32 %v986_v49, %v990_v51  ;;  %v1015_v20 = vmin.f32 %v988_v50, %v992_v18  ;;  %v994_v55 = vsel %vm978_vm11, %v2267_v6, 64.0 }
 0x24c   : > { %v996_v56 = vsel %vm980_vm12, %v2269_v7, 64.0  ;;  %v998_v3 = vsel %vm982_vm14, %v2275_v9, 64.0  ;;  %v1000_v8 = vsel %vm984_vm15, %v2284_v31, 64.0 }
 0x24d   : > { %v1008_v54 = vrot.slane %v1007_v52, 4  ;;  %v1016_v57 = vmin.f32 %v1014_v19, %v994_v55  ;;  %v1017_v58 = vmin.f32 %v1015_v20, %v996_v56 }
 0x24f   : > { %v1009_v1 = vmin.f32 %v1007_v52, %v1008_v54  ;;  %v1018_v15 = vmin.f32 %v1016_v57, %v998_v3  ;;  %v1019_v10 = vmin.f32 %v1017_v58, %v1000_v8 }
 0x251   : > { %v1010_v4 = vrot.slane %v1009_v1, 2  ;;  %v1020_v30 = vmin.f32 %v1018_v15, %v1019_v10 }
 0x253   : > { %v1011_v33 = vmin.f32 %v1009_v1, %v1010_v4  ;;  %v1021_v34 = vrot.slane %v1020_v30, 4 }
 0x255   : > { %v1012_v62 = vrot.slane %v1011_v33, 1  ;;  %v1022_v35 = vmin.f32 %v1020_v30, %v1021_v34 }
 0x257   : > { %v2312_v36 = vmin.f32 %v1011_v33, %v1012_v62  ;;  %v1023_v38 = vrot.slane %v1022_v35, 2 }
 0x259   : > { %vm2836_vm13 = vcmp.eq.f32.partialorder %v2258_v59, %v2312_v36  ;;  %vm2838_vm0 = vcmp.eq.f32.partialorder %v2260_v61, %v2312_v36  ;;  %vm2840_vm1 = vcmp.eq.f32.partialorder %v2262_v63, %v2312_v36  ;;  %vm2842_vm2 = vcmp.eq.f32.partialorder %v2264_v16, %v2312_v36 }
 0x25a   : > { %vm2844_vm3 = vcmp.eq.f32.partialorder %v2267_v6, %v2312_v36  ;;  %vm2846_vm4 = vcmp.eq.f32.partialorder %v2269_v7, %v2312_v36  ;;  %v2330_v39 = vsel %vm2836_vm13, -1e+30, %v2203_v5  ;;  %v2336_v40 = vsel %vm2838_vm0, -1e+30, %v2207_v14 }
 0x25b   : > { %v2342_v41 = vsel %vm2840_vm1, -1e+30, %v2211_v21  ;;  %v1024_v43 = vmin.f32 %v1022_v35, %v1023_v38  ;;  %vm2848_vm5 = vcmp.eq.f32.partialorder %v2275_v9, %v2312_v36  ;;  %v2350_v5 = vsel %vm2842_vm2, -1e+30, %v2215_v23 }
 0x25c   : > { %v1091_v14 = vmax.f32 %v2330_v39, %v2342_v41  ;;  %vm2850_vm7 = vcmp.eq.f32.partialorder %v2284_v31, %v2312_v36  ;;  %v2360_v21 = vsel %vm2844_vm3, -1e+30, %v2219_v25  ;;  %v1092_v44 = vmax.f32 %v2336_v40, %v2350_v5 }
 0x25d   : > { %v1025_v45 = vrot.slane %v1024_v43, 1  ;;  %v2368_v23 = vsel %vm2846_vm4, -1e+30, %v2223_v27  ;;  %v2375_v47 = vsel %vm2848_vm5, -1e+30, %v2227_v29 }
 0x25e   : > { %v1093_v46 = vmax.f32 %v1091_v14, %v2360_v21  ;;  %v1094_v25 = vmax.f32 %v1092_v44, %v2368_v23  ;;  %v2384_v49 = vsel %vm2850_vm7, -1e+30, %v2241_v37 }
 0x25f   : > { %v2378_v48 = vmin.f32 %v1024_v43, %v1025_v45 }
 0x260   : > { %v1095_v27 = vmax.f32 %v1093_v46, %v2375_v47  ;;  %v1096_v50 = vmax.f32 %v1094_v25, %v2384_v49 }
 0x261   : > { %vm2837_vm8 = vcmp.eq.f32.partialorder %v2258_v59, %v2378_v48  ;;  %vm2839_vm9 = vcmp.eq.f32.partialorder %v2260_v61, %v2378_v48  ;;  %vm2841_vm10 = vcmp.eq.f32.partialorder %v2262_v63, %v2378_v48  ;;  %vm2843_vm11 = vcmp.eq.f32.partialorder %v2264_v16, %v2378_v48 }
 0x262   : > { %v1097_v29 = vmax.f32 %v1095_v27, %v1096_v50  ;;  %vm2845_vm12 = vcmp.eq.f32.partialorder %v2267_v6, %v2378_v48  ;;  %v2402_v37 = vsel %vm2837_vm8, -1e+30, %v2205_v13  ;;  %v2408_v51 = vsel %vm2839_vm9, -1e+30, %v2209_v17 }
 0x263   : > { %vm2847_vm14 = vcmp.eq.f32.partialorder %v2269_v7, %v2378_v48  ;;  %v2416_v18 = vsel %vm2841_vm10, -1e+30, %v2213_v22  ;;  %v2422_v13 = vsel %vm2843_vm11, -1e+30, %v2217_v24  ;;  %vm2849_vm15 = vcmp.eq.f32.partialorder %v2275_v9, %v2378_v48 }
 0x264   : > { %v1098_v52 = vrot.slane %v1097_v29, 4  ;;  %v1104_v17 = vmax.f32 %v2402_v37, %v2416_v18  ;;  %vm1042_vm6 = vcmp.eq.f32.partialorder %v2284_v31, %v2378_v48  ;;  %v2434_v22 = vsel %vm2845_vm12, -1e+30, %v2221_v26 }
 0x265   : > { %v1105_v24 = vmax.f32 %v2408_v51, %v2422_v13  ;;  %v2442_v20 = vsel %vm2847_vm14, -1e+30, %v2225_v28  ;;  %v2449_v55 = vsel %vm2849_vm15, -1e+30, %v2233_v32  ;;  %v2456_v57 = vsel %vm1042_vm6, -1e+30, %v2247_v42 }
 0x266   : > { %v1099_v19 = vmax.f32 %v1097_v29, %v1098_v52  ;;  %v1106_v54 = vmax.f32 %v1104_v17, %v2434_v22 }
 0x267   : > { %v1107_v26 = vmax.f32 %v1105_v24, %v2442_v20 }
 0x268   : > { %v1100_v56 = vrot.slane %v1099_v19, 2  ;;  %v1108_v28 = vmax.f32 %v1106_v54, %v2449_v55 }
 0x269   : > { %v1109_v58 = vmax.f32 %v1107_v26, %v2456_v57 }
 0x26a   : > { %v1101_v1 = vmax.f32 %v1099_v19, %v1100_v56 }
 0x26b   : > { %v1110_v3 = vmax.f32 %v1108_v28, %v1109_v58 }
 0x26c   : > { %v1102_v8 = vrot.slane %v1101_v1, 1 }
 0x26d   : > { %v1111_v15 = vrot.slane %v1110_v3, 4 }
 0x26e   : > { %v1103_v10 = vmax.f32 %v1101_v1, %v1102_v8 }
 0x26f   : > { %v1112_v32 = vmax.f32 %v1110_v3, %v1111_v15 }
 0x270   : > { %vm1117_vm13 = vcmp.ge.f32.partialorder %v2330_v39, %v1103_v10  ;;  %vm1119_vm8 = vcmp.ge.f32.partialorder %v2336_v40, %v1103_v10  ;;  %vm1121_vm0 = vcmp.ge.f32.partialorder %v2342_v41, %v1103_v10  ;;  %vm1123_vm9 = vcmp.ge.f32.partialorder %v2350_v5, %v1103_v10 }
 0x271   : > { %vm1125_vm1 = vcmp.ge.f32.partialorder %v2360_v21, %v1103_v10  ;;  %vm1127_vm10 = vcmp.ge.f32.partialorder %v2368_v23, %v1103_v10  ;;  %v1133_v42 = vsel %vm1117_vm13, %v2258_v59, 64.0  ;;  %v1135_v4 = vsel %vm1119_vm8, %v2260_v61, 64.0 }
 0x272   : > { %v1137_v30 = vsel %vm1121_vm0, %v2262_v63, 64.0  ;;  %v1139_v33 = vsel %vm1123_vm9, %v2264_v16, 64.0  ;;  %vm1129_vm2 = vcmp.ge.f32.partialorder %v2375_v47, %v1103_v10  ;;  %vm1131_vm11 = vcmp.ge.f32.partialorder %v2384_v49, %v1103_v10 }
 0x273   : > { %v1149_v34 = vmin.f32 %v1133_v42, %v1137_v30  ;;  %v1150_v62 = vmin.f32 %v1135_v4, %v1139_v33  ;;  %v1113_v35 = vrot.slane %v1112_v32, 2  ;;  %v1141_v38 = vsel %vm1125_vm1, %v2267_v6, 64.0 }
 0x274   : > { %v1143_v43 = vsel %vm1127_vm10, %v2269_v7, 64.0  ;;  %v1145_v46 = vsel %vm1129_vm2, %v2275_v9, 64.0  ;;  %v1147_v25 = vsel %vm1131_vm11, %v2284_v31, 64.0 }
 0x275   : > { %v1151_v14 = vmin.f32 %v1149_v34, %v1141_v38  ;;  %v1152_v44 = vmin.f32 %v1150_v62, %v1143_v43  ;;  %v1114_v45 = vmax.f32 %v1112_v32, %v1113_v35 }
 0x277   : > { %v1153_v27 = vmin.f32 %v1151_v14, %v1145_v46  ;;  %v1154_v50 = vmin.f32 %v1152_v44, %v1147_v25  ;;  %v1115_v29 = vrot.slane %v1114_v45, 1 }
 0x279   : > { %v1155_v52 = vmin.f32 %v1153_v27, %v1154_v50  ;;  %v1116_v17 = vmax.f32 %v1114_v45, %v1115_v29 }
 0x27b   : > { %v1156_v24 = vrot.slane %v1155_v52, 4  ;;  %vm1118_vm13 = vcmp.ge.f32.partialorder %v2402_v37, %v1116_v17  ;;  %vm1120_vm0 = vcmp.ge.f32.partialorder %v2408_v51, %v1116_v17  ;;  %vm1122_vm1 = vcmp.ge.f32.partialorder %v2416_v18, %v1116_v17 }
 0x27c   : > { %vm1124_vm8 = vcmp.ge.f32.partialorder %v2422_v13, %v1116_v17  ;;  %vm1126_vm9 = vcmp.ge.f32.partialorder %v2434_v22, %v1116_v17  ;;  %v1134_v54 = vsel %vm1118_vm13, %v2258_v59, 64.0  ;;  %v1136_v26 = vsel %vm1120_vm0, %v2260_v61, 64.0 }
 0x27d   : > { %v1157_v19 = vmin.f32 %v1155_v52, %v1156_v24  ;;  %vm1128_vm2 = vcmp.ge.f32.partialorder %v2442_v20, %v1116_v17  ;;  %v1138_v56 = vsel %vm1122_vm1, %v2262_v63, 64.0  ;;  %v1140_v28 = vsel %vm1124_vm8, %v2264_v16, 64.0 }
 0x27e   : > { %vm1130_vm10 = vcmp.ge.f32.partialorder %v2449_v55, %v1116_v17  ;;  %v1162_v1 = vmin.f32 %v1134_v54, %v1138_v56  ;;  %vm1132_vm11 = vcmp.ge.f32.partialorder %v2456_v57, %v1116_v17  ;;  %v1142_v3 = vsel %vm1126_vm9, %v2267_v6, 64.0 }
 0x27f   : > { %v1158_v58 = vrot.slane %v1157_v19, 2  ;;  %v1163_v8 = vmin.f32 %v1136_v26, %v1140_v28  ;;  %v1144_v10 = vsel %vm1128_vm2, %v2269_v7, 64.0  ;;  %v1146_v42 = vsel %vm1130_vm10, %v2275_v9, 64.0 }
 0x280   : > { %v1164_v32 = vmin.f32 %v1162_v1, %v1142_v3  ;;  %v1148_v33 = vsel %vm1132_vm11, %v2284_v31, 64.0  ;;  %v1973_v56 = vmov 1.0  }
 0x281   : > { %v1159_v15 = vmin.f32 %v1157_v19, %v1158_v58  ;;  %v1165_v4 = vmin.f32 %v1163_v8, %v1144_v10 }
 0x282   : > { %v1166_v34 = vmin.f32 %v1164_v32, %v1146_v42 }
 0x283   : > { %v1160_v30 = vrot.slane %v1159_v15, 1  ;;  %v1167_v62 = vmin.f32 %v1165_v4, %v1148_v33 }
 0x285   : > { %v2492_v35 = vmin.f32 %v1159_v15, %v1160_v30  ;;  %v1168_v38 = vmin.f32 %v1166_v34, %v1167_v62  ;;  %v1224_v30 = vrot.slane %v2170_v60, 2 }
 0x287   : > { %v1169_v43 = vrot.slane %v1168_v38, 4  ;;  %vm1181_vm13 = vcmp.eq.f32.partialorder %v2264_v16, %v2492_v35  ;;  %vm1185_vm0 = vcmp.eq.f32.partialorder %v2269_v7, %v2492_v35  ;;  %vm1183_vm1 = vcmp.eq.f32.partialorder %v2267_v6, %v2492_v35 }
 0x288   : > { %v2504_v14 = vsel %vm1181_vm13, -1e+30, %v2350_v5  ;;  %vm1179_vm8 = vcmp.eq.f32.partialorder %v2262_v63, %v2492_v35  ;;  %vm1177_vm9 = vcmp.eq.f32.partialorder %v2260_v61, %v2492_v35  ;;  %vm1175_vm2 = vcmp.eq.f32.partialorder %v2258_v59, %v2492_v35 }
 0x289   : > { %v1170_v44 = vmin.f32 %v1168_v38, %v1169_v43  ;;  %v2512_v45 = vsel %vm1179_vm8, -1e+30, %v2342_v41  ;;  %vm1189_vm10 = vcmp.eq.f32.partialorder %v2284_v31, %v2492_v35  ;;  %v2524_v5 = vsel %vm1177_vm9, -1e+30, %v2336_v40 }
 0x28a   : > { %v2530_v41 = vsel %vm1175_vm2, -1e+30, %v2330_v39  ;;  %vm1187_vm11 = vcmp.eq.f32.partialorder %v2275_v9, %v2492_v35  ;;  %v1394_v25 = vmax.f32 %v2524_v5, %v2504_v14  ;;  %v2542_v40 = vsel %vm1185_vm0, -1e+30, %v2368_v23 }
 0x28b   : > { %v1171_v46 = vrot.slane %v1170_v44, 2  ;;  %v1393_v27 = vmax.f32 %v2530_v41, %v2512_v45  ;;  %v2548_v39 = vsel %vm1183_vm1, -1e+30, %v2360_v21  ;;  %v2556_v17 = vsel %vm1189_vm10, -1e+30, %v2384_v49 }
 0x28c   : > { %v1396_v29 = vmax.f32 %v1394_v25, %v2542_v40  ;;  %v2562_v23 = vsel %vm1187_vm11, -1e+30, %v2375_v47 }
 0x28d   : > { %v1172_v50 = vmin.f32 %v1170_v44, %v1171_v46  ;;  %v1395_v52 = vmax.f32 %v1393_v27, %v2548_v39 }
 0x28e   : > { %v1398_v21 = vmax.f32 %v1396_v29, %v2556_v17 }
 0x28f   : > { %v1173_v24 = vrot.slane %v1172_v50, 1  ;;  %v1397_v19 = vmax.f32 %v1395_v52, %v2562_v23 }
 0x291   : > { %v1174_v54 = vmin.f32 %v1172_v50, %v1173_v24  ;;  %v1399_v26 = vmax.f32 %v1397_v19, %v1398_v21 }
 0x293   : > { %vm1190_vm3 = vcmp.eq.f32.partialorder %v2284_v31, %v1174_v54  ;;  %vm1188_vm12 = vcmp.eq.f32.partialorder %v2275_v9, %v1174_v54  ;;  %vm1186_vm4 = vcmp.eq.f32.partialorder %v2269_v7, %v1174_v54  ;;  %vm1182_vm14 = vcmp.eq.f32.partialorder %v2264_v16, %v1174_v54 }
 0x294   : > { %1845 = vmatprep.subr.msk.mxu1 %vm1190_vm3, %v1973_v56  ;;  %vm1184_vm5 = vcmp.eq.f32.partialorder %v2267_v6, %v1174_v54  ;;  %v2581_v47 = vsel %vm1182_vm14, -1e+30, %v2422_v13  ;;  %vm1180_vm15 = vcmp.eq.f32.partialorder %v2262_v63, %v1174_v54  ;;  %vm1178_vm7 = vcmp.eq.f32.partialorder %v2260_v61, %v1174_v54 }
 0x295   : > { %1846 = vmatpush1.msk.msra.mxu1 %vm1189_vm10, %v1973_v56  ;;  %v2591_v49 = vsel %vm1180_vm15, -1e+30, %v2416_v18  ;;  %v2596_v28 = vsel %vm1178_vm7, -1e+30, %v2408_v51  ;;  %vm1176_vm10 = vcmp.eq.f32.partialorder %v2258_v59, %v1174_v54  ;;  %v1400_v13 = vrot.slane %v1399_v26, 4 }
 0x296   : > { %1847 = vmatprep.subr.msk.mxu1 %vm1188_vm12, %v1973_v56  ;;  %v1407_v58 = vmax.f32 %v2596_v28, %v2581_v47  ;;  %v2608_v18 = vsel %vm1176_vm10, -1e+30, %v2402_v37  ;;  %v2616_v51 = vsel %vm1186_vm4, -1e+30, %v2442_v20  ;;  %v2627_v37 = vsel %vm1184_vm5, -1e+30, %v2434_v22 }
 0x297   : > { %1848 = vmatpush1.msk.msra.mxu1 %vm1187_vm11, %v1973_v56  ;;  %v1406_v1 = vmax.f32 %v2608_v18, %v2591_v49  ;;  %v1401_v3 = vmax.f32 %v1399_v26, %v1400_v13  ;;  %v2633_v20 = vsel %vm1190_vm3, -1e+30, %v2456_v57  ;;  %v2642_v32 = vsel %vm1188_vm12, -1e+30, %v2449_v55 }
 0x298   : > { %1849 = vmatprep.subr.msk.mxu1 %vm1186_vm4, %v1973_v56  ;;  %v1409_v8 = vmax.f32 %v1407_v58, %v2616_v51  ;;  %vm1225_vm3 = vcmask 523264   ;;  %vm2856_vm11 = vcmp.eq.f32.partialorder %v2267_v6, %v2378_v48 }
 0x299   : > { %1850 = vmatpush1.msk.msra.mxu1 %vm1185_vm0, %v1973_v56  ;;  %v1408_v15 = vmax.f32 %v1406_v1, %v2627_v37  ;;  %v1402_v10 = vrot.slane %v1401_v3, 2  ;;  %vm2853_vm0 = vcmp.eq.f32.partialorder %v2275_v9, %v2312_v36 }
 0x29a   : > { %1851 = vmatprep.subr.msk.mxu1 %vm1184_vm5, %v1973_v56  ;;  %v1411_v22 = vmax.f32 %v1409_v8, %v2633_v20 }
 0x29b   : > { %1852 = vmatpush1.msk.msra.mxu1 %vm1183_vm1, %v1973_v56  ;;  %v1410_v57 = vmax.f32 %v1408_v15, %v2642_v32  ;;  %v1403_v42 = vmax.f32 %v1401_v3, %v1402_v10 }
 0x29c   : > { %1853 = vmatprep.subr.msk.mxu1 %vm1182_vm14, %v1973_v56 }
 0x29d   : > { %1854 = vmatpush1.msk.msra.mxu1 %vm1181_vm13, %v1973_v56  ;;  %v1412_v55 = vmax.f32 %v1410_v57, %v1411_v22  ;;  %v1404_v4 = vrot.slane %v1403_v42, 1 }
 0x29e   : > { %1855 = vmatprep.subr.msk.mxu1 %vm1180_vm15, %v1973_v56  ;;  %vm2851_vm15 = vcmp.eq.f32.partialorder %v2284_v31, %v2312_v36 }
 0x29f   : > { %1856 = vmatpush1.msk.msra.mxu1 %vm1179_vm8, %v1973_v56  ;;  %v1413_v33 = vrot.slane %v1412_v55, 4  ;;  %v1405_v34 = vmax.f32 %v1403_v42, %v1404_v4 }
 0x2a0   : > { %1857 = vmatprep.subr.msk.mxu1 %vm1178_vm7, %v1973_v56 }
 0x2a1   : > { %1858 = vmatpush1.msk.msra.mxu1 %vm1177_vm9, %v1973_v56  ;;  %v1414_v62 = vmax.f32 %v1412_v55, %v1413_v33  ;;  %vm1419_vm4 = vcmp.ge.f32.partialorder %v2530_v41, %v1405_v34  ;;  %vm1421_vm5 = vcmp.ge.f32.partialorder %v2524_v5, %v1405_v34  ;;  %vm1423_vm12 = vcmp.ge.f32.partialorder %v2512_v45, %v1405_v34 }
 0x2a2   : > { %1859 = vmatprep.subr.msk.mxu1 %vm1176_vm10, %v1973_v56  ;;  %v1435_v60 = vsel %vm1419_vm4, %v2258_v59, 64.0  ;;  %vm1425_vm7 = vcmp.ge.f32.partialorder %v2504_v14, %v1405_v34  ;;  %vm1427_vm14 = vcmp.ge.f32.partialorder %v2548_v39, %v1405_v34  ;;  %v1437_v43 = vsel %vm1421_vm5, %v2260_v61, 64.0 }
 0x2a3   : > { %1860 = vmatpush1.msk.msra.mxu1 %vm1175_vm2, %v1973_v56  ;;  %v1415_v38 = vrot.slane %v1414_v62, 2  ;;  %vm1429_vm13 = vcmp.ge.f32.partialorder %v2542_v40, %v1405_v34  ;;  %v1439_v35 = vsel %vm1423_vm12, %v2262_v63, 64.0  ;;  %v1441_v14 = vsel %vm1425_vm7, %v2264_v16, 64.0 }
 0x2a4   : > { %1862 = vmatprep.subr.msk.mxu1 %vm1042_vm6, %v1973_v56  ;;  %1861 = vmatmul.mubr.msk.f32.vlgmr.msra.gmra.mxu1 %vm1225_vm3, %v1224_v30  ;;  %vm2852_vm6 = vcmp.eq.f32.partialorder %v2275_v9, %v2378_v48  ;;  %v1451_v45 = vmin.f32 %v1435_v60, %v1439_v35  ;;  %vm1431_vm1 = vcmp.ge.f32.partialorder %v2562_v23, %v1405_v34  ;;  %v1443_v5 = vsel %vm1427_vm14, %v2267_v6, 64.0 }
 0x2a5   : > { %1863 = vmatpush1.msk.msra.mxu1 %vm2851_vm15, %v1973_v56  ;;  %1370 = vmatprep.mubr.f32.mxu1 %v1963_v2  ;;  %v1416_v44 = vmax.f32 %v1414_v62, %v1415_v38  ;;  %vm1433_vm8 = vcmp.ge.f32.partialorder %v2556_v17, %v1405_v34  ;;  %v1452_v41 = vmin.f32 %v1437_v43, %v1441_v14  ;;  %v1445_v25 = vsel %vm1429_vm13, %v2269_v7, 64.0 }
 0x2a6   : > { %1864 = vmatprep.subr.msk.mxu1 %vm2852_vm6, %v1973_v56  ;;  %vm2854_vm9 = vcmp.eq.f32.partialorder %v2269_v7, %v2378_v48  ;;  %v1453_v27 = vmin.f32 %v1451_v45, %v1443_v5  ;;  %vm2855_vm2 = vcmp.eq.f32.partialorder %v2269_v7, %v2312_v36  ;;  %v1447_v50 = vsel %vm1431_vm1, %v2275_v9, 64.0  ;;  %v1613_v5 = vld [vmem:[%s2832_s3 + $0x28] sm:$0xf] }
 0x2a7   : > { %1865 = vmatpush1.msk.msra.mxu1 %vm2853_vm0, %v1973_v56  ;;  %v1417_v46 = vrot.slane %v1416_v44, 1  ;;  %v1454_v40 = vmin.f32 %v1452_v41, %v1445_v25  ;;  %v1449_v29 = vsel %vm1433_vm8, %v2284_v31, 64.0  ;;  %vm2857_vm10 = vcmp.eq.f32.partialorder %v2267_v6, %v2312_v36 }
 0x2a8   : > { %1866 = vmatprep.subr.msk.mxu1 %vm2854_vm9, %v1973_v56  ;;  %v1455_v52 = vmin.f32 %v1453_v27, %v1447_v50  ;;  %vm2858_vm5 = vcmp.eq.f32.partialorder %v2264_v16, %v2378_v48  ;;  %vm2859_vm15 = vcmp.eq.f32.partialorder %v2264_v16, %v2312_v36  ;;  %vm2860_vm6 = vcmp.eq.f32.partialorder %v2262_v63, %v2378_v48 }
 0x2a9   : > { %1867 = vmatpush1.msk.msra.mxu1 %vm2855_vm2, %v1973_v56  ;;  %v1418_v39 = vmax.f32 %v1416_v44, %v1417_v46  ;;  %v1456_v17 = vmin.f32 %v1454_v40, %v1449_v29  ;;  %vm2861_vm1 = vcmp.eq.f32.partialorder %v2262_v63, %v2312_v36  ;;  %vm2862_vm9 = vcmp.eq.f32.partialorder %v2260_v61, %v2378_v48 }
 0x2aa   : > { %1868 = vmatprep.subr.msk.mxu1 %vm2856_vm11, %v1973_v56  ;;  %vm2863_vm11 = vcmp.eq.f32.partialorder %v2260_v61, %v2312_v36 }
 0x2ab   : > { %1869 = vmatpush1.msk.msra.mxu1 %vm2857_vm10, %v1973_v56  ;;  %vm1420_vm4 = vcmp.ge.f32.partialorder %v2608_v18, %v1418_v39  ;;  %vm1422_vm12 = vcmp.ge.f32.partialorder %v2596_v28, %v1418_v39  ;;  %vm1424_vm7 = vcmp.ge.f32.partialorder %v2591_v49, %v1418_v39  ;;  %vm1426_vm14 = vcmp.ge.f32.partialorder %v2581_v47, %v1418_v39 }
 0x2ac   : > { %1870 = vmatprep.subr.msk.mxu1 %vm2858_vm5, %v1973_v56  ;;  %v1436_v23 = vsel %vm1420_vm4, %v2258_v59, 64.0  ;;  %vm1428_vm13 = vcmp.ge.f32.partialorder %v2627_v37, %v1418_v39  ;;  %vm1430_vm0 = vcmp.ge.f32.partialorder %v2616_v51, %v1418_v39  ;;  %v1438_v24 = vsel %vm1422_vm12, %v2260_v61, 64.0 }
 0x2ad   : > { %1871 = vmatpush1.msk.msra.mxu1 %vm2859_vm15, %v1973_v56  ;;  %v1440_v21 = vsel %vm1424_vm7, %v2262_v63, 64.0  ;;  %v1442_v19 = vsel %vm1426_vm14, %v2264_v16, 64.0  ;;  %vm1432_vm8 = vcmp.ge.f32.partialorder %v2642_v32, %v1418_v39  ;;  %vm1434_vm2 = vcmp.ge.f32.partialorder %v2633_v20, %v1418_v39 }
 0x2ae   : > { %1872 = vmatprep.subr.msk.mxu1 %vm2860_vm6, %v1973_v56  ;;  %v1464_v54 = vmin.f32 %v1436_v23, %v1440_v21  ;;  %v1465_v26 = vmin.f32 %v1438_v24, %v1442_v19  ;;  %v1457_v47 = vmin.f32 %v1455_v52, %v1456_v17  ;;  %v1444_v49 = vsel %vm1428_vm13, %v2267_v6, 64.0 }
 0x2af   : > { %1873 = vmatpush1.msk.msra.mxu1 %vm2861_vm1, %v1973_v56  ;;  %v1446_v28 = vsel %vm1430_vm0, %v2269_v7, 64.0  ;;  %vm2864_vm10 = vcmp.eq.f32.partialorder %v2258_v59, %v2378_v48  ;;  %vm2865_vm4 = vcmp.eq.f32.partialorder %v2258_v59, %v2312_v36  ;;  %v1448_v51 = vsel %vm1432_vm8, %v2275_v9, 64.0 }
 0x2b0   : > { %1874 = vmatprep.subr.msk.mxu1 %vm2862_vm9, %v1973_v56  ;;  %v1466_v13 = vmin.f32 %v1464_v54, %v1444_v49  ;;  %v1467_v58 = vmin.f32 %v1465_v26, %v1446_v28  ;;  %v1458_v18 = vrot.slane %v1457_v47, 4  ;;  %v1450_v1 = vsel %vm1434_vm2, %v2284_v31, 64.0 }
 0x2b1   : > { %1875 = vmatpush1.msk.msra.mxu1 %vm2863_vm11, %v1973_v56 }
 0x2b2   : > { %1876 = vmatprep.subr.msk.mxu1 %vm2864_vm10, %v1973_v56  ;;  %v1468_v3 = vmin.f32 %v1466_v13, %v1448_v51  ;;  %v1469_v37 = vmin.f32 %v1467_v58, %v1450_v1  ;;  %v1459_v8 = vmin.f32 %v1457_v47, %v1458_v18 }
 0x2b3   : > { %1877 = vmatpush1.msk.msra.mxu1 %vm2865_vm4, %v1973_v56 }
 0x2b4   : > { %1878 = vmatmul.mubr.msk.f32.vlgmr.msra.gmra.mxu1 %vm1225_vm3, %v2176_v0  ;;  %v1470_v48 = vmin.f32 %v1468_v3, %v1469_v37  ;;  %v1460_v20 = vrot.slane %v1459_v8, 2 }
 0x2b5   : > { %1696 = vmatprep.mubr.f32.mxu1 %v1963_v2 }
 0x2b6   : > { %v1471_v15 = vrot.slane %v1470_v48, 4  ;;  %v1461_v10 = vmin.f32 %v1459_v8, %v1460_v20 }
 0x2b8   : > { %v1472_v32 = vmin.f32 %v1470_v48, %v1471_v15  ;;  %v1462_v36 = vrot.slane %v1461_v10, 1 }
 0x2ba   : > { %v1473_v22 = vrot.slane %v1472_v32, 2  ;;  %v1463_v55 = vmin.f32 %v1461_v10, %v1462_v36 }
 0x2bc   : > { %v1474_v57 = vmin.f32 %v1472_v32, %v1473_v22  ;;  %vm1491_vm12 = vcmp.eq.f32.partialorder %v2284_v31, %v1463_v55  ;;  %vm1489_vm14 = vcmp.eq.f32.partialorder %v2275_v9, %v1463_v55  ;;  %vm1487_vm13 = vcmp.eq.f32.partialorder %v2269_v7, %v1463_v55 }
 0x2bd   : > { %vm1485_vm0 = vcmp.eq.f32.partialorder %v2267_v6, %v1463_v55  ;;  %vm1483_vm8 = vcmp.eq.f32.partialorder %v2264_v16, %v1463_v55  ;;  %vm1481_vm2 = vcmp.eq.f32.partialorder %v2262_v63, %v1463_v55  ;;  %vm1479_vm10 = vcmp.eq.f32.partialorder %v2260_v61, %v1463_v55 }
 0x2be   : > { %v1475_v42 = vrot.slane %v1474_v57, 1 }
 0x2c0   : > { %v1476_v4 = vmin.f32 %v1474_v57, %v1475_v42 }
 0x2c2   : > { %vm1492_vm5 = vcmp.eq.f32.partialorder %v2284_v31, %v1476_v4  ;;  %vm1490_vm7 = vcmp.eq.f32.partialorder %v2275_v9, %v1476_v4  ;;  %vm1488_vm15 = vcmp.eq.f32.partialorder %v2269_v7, %v1476_v4  ;;  %vm1486_vm6 = vcmp.eq.f32.partialorder %v2267_v6, %v1476_v4 }
 0x2c3   : > { %1895 = vmatprep.subr.msk.mxu0 %vm1492_vm5, %v1973_v56  ;;  %vm1484_vm1 = vcmp.eq.f32.partialorder %v2264_v16, %v1476_v4  ;;  %vm1482_vm9 = vcmp.eq.f32.partialorder %v2262_v63, %v1476_v4  ;;  %vm1480_vm11 = vcmp.eq.f32.partialorder %v2260_v61, %v1476_v4  ;;  %vm1478_vm4 = vcmp.eq.f32.partialorder %v2258_v59, %v1476_v4  ;;  %v1607_v16 = vpop.permute.xlu1 %1606 }
 0x2c4   : > { %1896 = vmatpush1.msk.msra.mxu0 %vm1491_vm12, %v1973_v56  ;;  %vm1477_vm5 = vcmp.eq.f32.partialorder %v2258_v59, %v1463_v55  ;;  %vm1628_vm12 = vcmask 64512  }
 0x2c5   : > { %1897 = vmatprep.subr.msk.mxu0 %vm1490_vm7, %v1973_v56 }
 0x2c6   : > { %1898 = vmatpush1.msk.msra.mxu0 %vm1489_vm14, %v1973_v56 }
 0x2c7   : > { %1899 = vmatprep.subr.msk.mxu0 %vm1488_vm15, %v1973_v56  ;;  %v475_v62 = vpop.permute.xlu1 %474 }
 0x2c8   : > { %1900 = vmatpush1.msk.msra.mxu0 %vm1487_vm13, %v1973_v56  ;;  %v556_v59 = vadd.f32 %v2201_v12, %v475_v62  ;;  %v554_v38 = vadd.f32 %v2199_v11, %v475_v62 }
 0x2c9   : > { %1901 = vmatprep.subr.msk.mxu0 %vm1486_vm6, %v1973_v56 }
 0x2ca   : > { %1902 = vmatpush1.msk.msra.mxu0 %vm1485_vm0, %v1973_v56  ;;  %v559_v35 = vmax.f32 %v556_v59, 0.0  ;;  %v558_v44 = vmax.f32 %v554_v38, 0.0 }
 0x2cb   : > { %1903 = vmatprep.subr.msk.mxu0 %vm1484_vm1, %v1973_v56  ;;  %v1626_v11 = vpop.permute.xlu1 %1625 }
 0x2cc   : > { %1904 = vmatpush1.msk.msra.mxu0 %vm1483_vm8, %v1973_v56 }
 0x2cd   : > { %1905 = vmatprep.subr.msk.mxu0 %vm1482_vm9, %v1973_v56 }
 0x2ce   : > { %1906 = vmatpush1.msk.msra.mxu0 %vm1481_vm2, %v1973_v56 }
 0x2cf   : > { %1907 = vmatprep.subr.msk.mxu0 %vm1480_vm11, %v1973_v56 }
 0x2d0   : > { %1908 = vmatpush1.msk.msra.mxu0 %vm1479_vm10, %v1973_v56 }
 0x2d1   : > { %1909 = vmatprep.subr.msk.mxu0 %vm1478_vm4, %v1973_v56 }
 0x2d2   : > { %1910 = vmatpush1.msk.msra.mxu0 %vm1477_vm5, %v1973_v56 }
 0x2d3   : > { %1911 = vmatmul.mubr.msk.f32.vlgmr.msra.gmra.mxu0 %vm1225_vm3, %v2306_v53  ;;  %vm2866_vm3 = vcmask 1043456  }
 0x2d4   : > { %vm2867_vm7 = vmmov %vm2866_vm3 }
 0x364   : > { %v1294_v2 = vpop.f32.mrf.mxu1 }
 0x366   : > { %v1296_v0 = vpop.f32.mrf.mxu1 }
 0x374   : > { %v1372_v63 = vpop.f32.mrf.mxu1 }
 0x375   : > { %v1373_v7 = vadd.f32 %v1372_v63, %v1294_v2 }
 0x376   : > { %v1374_v6 = vpop.f32.mrf.mxu1 }
 0x377   : > { %v1375_v9 = vadd.f32 %v1374_v6, %v1296_v0 }
 0x393   : > { %v1596_v61 = vpop.f32.mrf.mxu0 }
 0x394   : > { %v1601_v31 = vadd.f32 %v1596_v61, %v1373_v7 }
 0x395   : > { %v1598_v30 = vpop.f32.mrf.mxu0 }
 0x396   : > { %v1609_v33 = vadd.f32 %v1607_v16, %v1601_v31  ;;  %v1602_v34 = vadd.f32 %v1598_v30, %v1375_v9 }
 0x398   : > { %v1611_v60 = vmax.f32 %v1609_v33, 0.0  ;;  %v1610_v56 = vadd.f32 %v1607_v16, %v1602_v34 }
 0x39a   : > { %v1612_v53 = vmax.f32 %v1610_v56, 0.0  ;;  %v1617_v43 = vrot.slane %v1611_v60, 4 }
 0x39c   : > { %v1618_v14 = vrot.slane %v1612_v53, 4  ;;  %v1621_v12 = vsel %vm2867_vm7, %v558_v44, %v1617_v43 }
 0x39e   : > { %v1622_v45 = vsel %vm2866_vm3, %v559_v35, %v1618_v14 }
 0x39f   : > { %1662 = vmatprep.subr.mxu1 %v1622_v45 }
 0x3a0   : > { %1663 = vmatpush1.msra.mxu1 %v1621_v12 }
 0x3a1   : > { %1912 = vmatmul.mubr.msk.f32.vlgmr.msra.gmra.mxu1 %vm1628_vm12, %v1613_v5 }
 0x461   : > { %v1698_v41 = vpop.f32.mrf.mxu1 }
 0x462   : > { %v1699_v25 = vadd.f32 %v1698_v41, %v1626_v11 }
 0x463   : > { %v1700_v46 = vpop.f32.mrf.mxu1 }
 0x464   : > { %v1701_v27 = vadd.f32 %v1700_v46, %v1626_v11 }
 0x466   : > { %v1705_v40 = vcombine.low %v1699_v25, %v1701_v27 }
 0x468   : > { %1707 = vst [vmem:[%s241_s9] sm:$0xff] %v1705_v40 }
 0x469 PF: > { %s15_s18 = sadd.s32 1, %s1960_s18  }
 0x46a   : > { %p12_p4 = scmp.ge.s32.totalorder %s15_s18, 4  }
 0x46c   :  { %14 = sbr.rel (!%p12_p4) target bundleno = 1 (0x1), region = 81 }

</bundles_post_ra>
